<compile_context>
chip_gen: v6e
topology: v6e:2x2x1
jax: 0.10.0
libtpu: 0.0.40
codegen_flags: <defaults>
</compile_context>

<pallas_src>
import jax
import jax.numpy as jnp
from jax.experimental import pallas as pl
from jax.experimental.pallas import tpu as pltpu

_F32 = jnp.float32
_BF16 = jnp.bfloat16


def _gate_activations(gates, c, H):
    """PyTorch nn.LSTMCell gate order (i, f, g, o), all gate math in f32.

    EUP work runs on the full (Bp, 4H) vreg: one sigmoid pass and one tanh pass over
    all gates, then a VPU lane-mask select picks the tanh lanes for the g-gate
    (instead of four separate 32-lane EUP passes).
    """
    sg = jax.nn.sigmoid(gates)
    th = jnp.tanh(gates)
    lane = jax.lax.broadcasted_iota(jnp.int32, gates.shape, 1)
    act = jnp.where((lane >= 2 * H) & (lane < 3 * H), th, sg)
    i = act[:, 0 * H:1 * H]
    f = act[:, 1 * H:2 * H]
    g = act[:, 2 * H:3 * H]
    o = act[:, 3 * H:4 * H]
    c_new = f * c + i * g
    return o * jnp.tanh(c_new), c_new


def _make_kernel(T, Bp, H1, H2, fuse_wide):
    if fuse_wide:
        # v6e/v7x path: per step, ONE 256-column MXU pass produces cell-2's gates for
        # step t and cell-1's h-projection for step t+1 (they are data-independent).
        def kernel(x_ref, w_ih1_ref, b1_ref, w_big_ref, b2_ref, w_out_ref,
                   b_out_ref, o_ref):
            # Hoisted cell-1 input projection over ALL timesteps (one big matmul).
            xp = jnp.dot(x_ref[...], w_ih1_ref[...],
                         preferred_element_type=_F32) + b1_ref[...]      # (T*Bp, 4H1)
            w_big = w_big_ref[...]
            b2_b = jnp.broadcast_to(b2_ref[...], (Bp, 4 * H2))           # hoisted

            c1 = jnp.zeros((Bp, H1), _F32)
            h2 = jnp.zeros((Bp, H2), _F32)
            c2 = jnp.zeros((Bp, H2), _F32)
            hproj1 = jnp.zeros((Bp, 4 * H1), _F32)     # h1(-1) @ W_hh1^T == 0
            ys = []
            for t in range(T):                          # static unroll (T traced-time)
                h1, c1 = _gate_activations(
                    xp[t * Bp:(t + 1) * Bp, :] + hproj1, c1, H1)
                cat = jnp.concatenate([h1, h2, h1], axis=-1).astype(_BF16)
                fused = jnp.dot(cat, w_big, preferred_element_type=_F32)  # (Bp, 4H2+4H1)
                h2, c2 = _gate_activations(fused[:, :4 * H2] + b2_b, c2, H2)
                hproj1 = fused[:, 4 * H2:]              # cell-1 h-proj for step t+1
                ys.append(h2)                           # stays in registers

            h2_all = jnp.concatenate(ys, axis=0).astype(_BF16)            # (T*Bp, H2)
            o_ref[...] = jnp.tanh(
                jnp.dot(h2_all, w_out_ref[...], preferred_element_type=_F32)
                + b_out_ref[...])
        return kernel

    # v5e path: two N=128 gate matmuls per step (128-wide MXU is already full).
    def kernel(x_ref, w_ih1_ref, b1_ref, w_hh1_ref, w_cat2_ref, b2_ref,
               w_out_ref, b_out_ref, o_ref):
        xp = jnp.dot(x_ref[...], w_ih1_ref[...],
                     preferred_element_type=_F32) + b1_ref[...]
        w_hh1 = w_hh1_ref[...]
        w_c2 = w_cat2_ref[...]
        b2_b = jnp.broadcast_to(b2_ref[...], (Bp, 4 * H2))

        h1 = jnp.zeros((Bp, H1), _F32)
        c1 = jnp.zeros((Bp, H1), _F32)
        h2 = jnp.zeros((Bp, H2), _F32)
        c2 = jnp.zeros((Bp, H2), _F32)
        ys = []
        for t in range(T):
            g1 = xp[t * Bp:(t + 1) * Bp, :] + jnp.dot(
                h1.astype(_BF16), w_hh1, preferred_element_type=_F32)
            h1, c1 = _gate_activations(g1, c1, H1)
            cat = jnp.concatenate([h1, h2], axis=-1).astype(_BF16)    # registers only
            g2 = jnp.dot(cat, w_c2, preferred_element_type=_F32) + b2_b
            h2, c2 = _gate_activations(g2, c2, H2)
            ys.append(h2)

        h2_all = jnp.concatenate(ys, axis=0).astype(_BF16)
        o_ref[...] = jnp.tanh(
            jnp.dot(h2_all, w_out_ref[...], preferred_element_type=_F32)
            + b_out_ref[...])
    return kernel


def _use_wide_fusion():
    # v5e's MXU is 4x128^2: a 128-column gate matmul already fills it, so keep the
    # unfused N=128 path there.  v6e/v7x (2x256^2) benefit from the 256-wide fusion.
    try:
        return "v5" not in jax.devices()[0].device_kind.lower()
    except Exception:  # pragma: no cover - defensive
        return True


def lstm_model_forward(x, params, fuse_wide=None):
    """x: (T, B, state_dim) float32 -> (T, B, action_dim) float32."""
    if fuse_wide is None:
        fuse_wide = _use_wide_fusion()

    T, B, D = x.shape
    H1 = params["w_hh1"].shape[1]
    H2 = params["w_hh2"].shape[1]
    A = params["w_out"].shape[0]

    SUB, LANE = 8, 128
    Bp = ((B + SUB - 1) // SUB) * SUB        # pad batch to a full f32 sublane tile
    Ap = ((A + LANE - 1) // LANE) * LANE     # lane-dense output head (A=4 -> 128)

    # ---- one-time weight prep in the wrapper (transpose / concat / pad / bf16) ----
    w_ih1_t = params["w_ih1"].T.astype(_BF16)                            # (D, 4H1)
    b1 = params["b1"].astype(_F32)                                       # (1, 4H1)
    b2 = params["b2"].astype(_F32)                                       # (1, 4H2)
    w_out_p = jnp.zeros((H2, Ap), _F32).at[:, :A].set(
        params["w_out"].T).astype(_BF16)                                 # (H2, Ap)
    b_out_p = jnp.zeros((1, Ap), _F32).at[:, :A].set(params["b_out"])    # (1, Ap)

    # Pad batch and fold time into the sublane axis: (T, Bp, D) -> (T*Bp, D).
    x_pad = jnp.pad(x, ((0, 0), (0, Bp - B), (0, 0))).astype(_BF16)
    x2 = x_pad.reshape(T * Bp, D)

    if fuse_wide:
        # Block-diagonal weight so [h1_t | h2_{t-1} | h1_t] @ w_big yields the cell-2
        # gates for step t (cols :4H2) and the cell-1 h-projection for step t+1
        # (cols 4H2:), in a single MXU pass.
        z = lambda r, c: jnp.zeros((r, c), _F32)
        w_big = jnp.concatenate([
            jnp.concatenate([params["w_ih2"].T, z(H1, 4 * H1)], axis=1),
            jnp.concatenate([params["w_hh2"].T, z(H2, 4 * H1)], axis=1),
            jnp.concatenate([z(H1, 4 * H2), params["w_hh1"].T], axis=1),
        ], axis=0).astype(_BF16)                                         # (2H1+H2, 4H2+4H1)
        args = (x2, w_ih1_t, b1, w_big, b2, w_out_p, b_out_p)
    else:
        w_hh1_t = params["w_hh1"].T.astype(_BF16)                        # (H1, 4H1)
        w_cat2 = jnp.concatenate([params["w_ih2"], params["w_hh2"]],
                                 axis=1).T.astype(_BF16)                 # (H1+H2, 4H2)
        args = (x2, w_ih1_t, b1, w_hh1_t, w_cat2, b2, w_out_p, b_out_p)

    vmem = pl.BlockSpec(memory_space=pltpu.MemorySpace.VMEM)
    out2 = pl.pallas_call(
        _make_kernel(T, Bp, H1, H2, fuse_wide),
        out_shape=jax.ShapeDtypeStruct((T * Bp, Ap), _F32),
        in_specs=[vmem] * len(args),
        out_specs=vmem,
    )(*args)

    return out2.reshape(T, Bp, Ap)[:, :B, :A]


def make_params(key, state_dim, hidden1, hidden2, action_dim):
    ks = jax.random.split(key, 9)
    s = lambda n: 1.0 / jnp.sqrt(jnp.float32(n))
    # Weight matrices are kept bf16-representable (they feed the MXU as bf16), so the
    # f32 reference and the kernel consume numerically identical weights.
    r = lambda a: a.astype(jnp.bfloat16).astype(jnp.float32)
    return {
        # LSTMCell 1: weight_ih (4H, D), weight_hh (4H, H), combined bias (1, 4H)
        "w_ih1": r(jax.random.normal(ks[0], (4 * hidden1, state_dim), jnp.float32) * s(hidden1)),
        "w_hh1": r(jax.random.normal(ks[1], (4 * hidden1, hidden1), jnp.float32) * s(hidden1)),
        "b1": (jax.random.normal(ks[2], (1, 4 * hidden1), jnp.float32)
               + jax.random.normal(ks[3], (1, 4 * hidden1), jnp.float32)) * s(hidden1),
        # LSTMCell 2
        "w_ih2": r(jax.random.normal(ks[4], (4 * hidden2, hidden1), jnp.float32) * s(hidden2)),
        "w_hh2": r(jax.random.normal(ks[5], (4 * hidden2, hidden2), jnp.float32) * s(hidden2)),
        "b2": (jax.random.normal(ks[6], (1, 4 * hidden2), jnp.float32)
               + jax.random.normal(ks[7], (1, 4 * hidden2), jnp.float32)) * s(hidden2),
        # network_out: Linear(hidden2 -> action_dim)
        "w_out": r(jax.random.normal(ks[8], (action_dim, hidden2), jnp.float32) * s(hidden2)),
        "b_out": jnp.zeros((1, action_dim), jnp.float32),
    }


def reference_forward(x, p):
    """Pure-JAX f32 reference reproducing the PyTorch 3-D forward branch."""
    T, B, D = x.shape
    H1 = p["w_hh1"].shape[1]
    H2 = p["w_hh2"].shape[1]

    def cell(x_t, h, c, w_ih, w_hh, b):
        gates = x_t @ w_ih.T + h @ w_hh.T + b
        H = h.shape[-1]
        i = jax.nn.sigmoid(gates[:, 0 * H:1 * H])
        f = jax.nn.sigmoid(gates[:, 1 * H:2 * H])
        g = jnp.tanh(gates[:, 2 * H:3 * H])
        o = jax.nn.sigmoid(gates[:, 3 * H:4 * H])
        c_new = f * c + i * g
        return o * jnp.tanh(c_new), c_new

    def step(carry, x_t):
        h1, c1, h2, c2 = carry
        h1, c1 = cell(x_t, h1, c1, p["w_ih1"], p["w_hh1"], p["b1"])
        h2, c2 = cell(h1, h2, c2, p["w_ih2"], p["w_hh2"], p["b2"])
        return (h1, c1, h2, c2), h2

    init = (jnp.zeros((B, H1)), jnp.zeros((B, H1)),
            jnp.zeros((B, H2)), jnp.zeros((B, H2)))
    _, ys = jax.lax.scan(step, init, x)
    return jnp.tanh(ys @ p["w_out"].T + p["b_out"])


if __name__ == "__main__":
    # Small shapes: seq=8, batch=2, state_dim=8, layers=(32, 32), action_dim=4
    T, B, STATE_DIM, H1, H2, ACTION_DIM = 8, 2, 8, 32, 32, 4

    key = jax.random.PRNGKey(0)
    k_x, k_p = jax.random.split(key)
    x = jax.random.normal(k_x, (T, B, STATE_DIM), jnp.float32)
    # Keep inputs bf16-representable so kernel (bf16 MXU operands) and f32 reference
    # see identical values; remaining drift comes only from in-loop h-state casts.
    x = x.astype(jnp.bfloat16).astype(jnp.float32)
    params = make_params(k_p, STATE_DIM, H1, H2, ACTION_DIM)

    ref = jax.block_until_ready(reference_forward(x, params))

    # Default path (auto-selected per chip generation).
    out = jax.block_until_ready(lstm_model_forward(x, params))
    assert out.shape == (T, B, ACTION_DIM)
    assert jnp.allclose(out, ref, atol=3e-2, rtol=1e-2), (
        f"mismatch vs reference: max abs err = {jnp.max(jnp.abs(out - ref))}")

    # Also validate the alternate matmul layout (256-wide fused vs. 128-wide unfused).
    out_alt = jax.block_until_ready(
        lstm_model_forward(x, params, fuse_wide=not _use_wide_fusion()))
    assert jnp.allclose(out_alt, ref, atol=3e-2, rtol=1e-2), (
        f"alt-path mismatch vs reference: max abs err = {jnp.max(jnp.abs(out_alt - ref))}")

    print("KERNEL_OK")
</pallas_src>

<mosaic_0001>
module attributes {stable_mosaic.version = 11 : i64} {
  func.func @kernel(%arg0: memref<64x8xbf16, #tpu.memory_space<vmem>>, %arg1: memref<8x128xbf16, #tpu.memory_space<vmem>>, %arg2: memref<1x128xf32, #tpu.memory_space<vmem>>, %arg3: memref<96x256xbf16, #tpu.memory_space<vmem>>, %arg4: memref<1x128xf32, #tpu.memory_space<vmem>>, %arg5: memref<32x128xbf16, #tpu.memory_space<vmem>>, %arg6: memref<1x128xf32, #tpu.memory_space<vmem>>, %arg7: memref<64x128xf32, #tpu.memory_space<vmem>>) attributes {dimension_semantics = [], scalar_prefetch = 0 : i64, scratch_operands = 0 : i64, tpu.core_type = #tpu.core_type<tc>} {
    %c0 = arith.constant 0 : index
    %c0_0 = arith.constant 0 : index
    %0 = vector.load %arg0[%c0, %c0_0] : memref<64x8xbf16, #tpu.memory_space<vmem>>, vector<64x8xbf16>
    %c0_1 = arith.constant 0 : index
    %c0_2 = arith.constant 0 : index
    %1 = vector.load %arg1[%c0_1, %c0_2] : memref<8x128xbf16, #tpu.memory_space<vmem>>, vector<8x128xbf16>
    %cst = arith.constant dense<0.000000e+00> : vector<64x128xf32>
    %2 = tpu.matmul %0, %1, %cst {dimension_numbers = #tpu.dot_dimension_numbers<[1], [0], [0], [1], [0, 0, 1, 1], [], []>} : vector<64x8xbf16>, vector<8x128xbf16>, vector<64x128xf32> -> vector<64x128xf32>
    %c0_3 = arith.constant 0 : index
    %c0_4 = arith.constant 0 : index
    %3 = vector.load %arg2[%c0_3, %c0_4] : memref<1x128xf32, #tpu.memory_space<vmem>>, vector<1x128xf32>
    %4 = vector.broadcast %3 : vector<1x128xf32> to vector<64x128xf32>
    %5 = arith.addf %2, %4 : vector<64x128xf32>
    %c0_5 = arith.constant 0 : index
    %c0_6 = arith.constant 0 : index
    %6 = vector.load %arg3[%c0_5, %c0_6] : memref<96x256xbf16, #tpu.memory_space<vmem>>, vector<96x256xbf16>
    %c0_7 = arith.constant 0 : index
    %c0_8 = arith.constant 0 : index
    %7 = vector.load %arg4[%c0_7, %c0_8] : memref<1x128xf32, #tpu.memory_space<vmem>>, vector<1x128xf32>
    %8 = vector.shape_cast %7 : vector<1x128xf32> to vector<1x128xf32>
    %9 = vector.broadcast %8 : vector<1x128xf32> to vector<8x128xf32>
    %cst_9 = arith.constant 0.000000e+00 : f32
    %10 = vector.broadcast %cst_9 : f32 to vector<8x32xf32>
    %cst_10 = arith.constant 0.000000e+00 : f32
    %11 = vector.broadcast %cst_10 : f32 to vector<8x32xf32>
    %cst_11 = arith.constant 0.000000e+00 : f32
    %12 = vector.broadcast %cst_11 : f32 to vector<8x32xf32>
    %cst_12 = arith.constant 0.000000e+00 : f32
    %13 = vector.broadcast %cst_12 : f32 to vector<8x128xf32>
    %14 = vector.extract_strided_slice %5 {offsets = [0, 0], sizes = [8, 128], strides = [1, 1]} : vector<64x128xf32> to vector<8x128xf32>
    %15 = arith.addf %14, %13 : vector<8x128xf32>
    %16 = arith.negf %15 : vector<8x128xf32>
    %17 = math.exp %16 : vector<8x128xf32>
    %cst_13 = arith.constant 1.000000e+00 : f32
    %18 = vector.broadcast %cst_13 : f32 to vector<8x128xf32>
    %19 = arith.addf %18, %17 : vector<8x128xf32>
    %20 = arith.divf %18, %19 : vector<8x128xf32>
    %21 = math.tanh %15 : vector<8x128xf32>
    %22 = tpu.iota {dimensions = array<i32: 1>} : vector<8x128xi32>
    %c64_i32 = arith.constant 64 : i32
    %23 = vector.broadcast %c64_i32 : i32 to vector<8x128xi32>
    %24 = arith.cmpi sge, %22, %23 : vector<8x128xi32>
    %c96_i32 = arith.constant 96 : i32
    %25 = vector.broadcast %c96_i32 : i32 to vector<8x128xi32>
    %26 = arith.cmpi slt, %22, %25 : vector<8x128xi32>
    %27 = arith.andi %24, %26 : vector<8x128xi1>
    %28 = arith.select %27, %21, %20 : vector<8x128xi1>, vector<8x128xf32>
    %29 = vector.extract_strided_slice %28 {offsets = [0, 0], sizes = [8, 32], strides = [1, 1]} : vector<8x128xf32> to vector<8x32xf32>
    %30 = vector.extract_strided_slice %28 {offsets = [0, 32], sizes = [8, 32], strides = [1, 1]} : vector<8x128xf32> to vector<8x32xf32>
    %31 = vector.extract_strided_slice %28 {offsets = [0, 64], sizes = [8, 32], strides = [1, 1]} : vector<8x128xf32> to vector<8x32xf32>
    %32 = vector.extract_strided_slice %28 {offsets = [0, 96], sizes = [8, 32], strides = [1, 1]} : vector<8x128xf32> to vector<8x32xf32>
    %33 = arith.mulf %30, %10 : vector<8x32xf32>
    %34 = arith.mulf %29, %31 : vector<8x32xf32>
    %35 = arith.addf %33, %34 : vector<8x32xf32>
    %36 = math.tanh %35 : vector<8x32xf32>
    %37 = arith.mulf %32, %36 : vector<8x32xf32>
    %38 = tpu.concatenate %37, %11, %37 in 1 : vector<8x32xf32>, vector<8x32xf32>, vector<8x32xf32> -> vector<8x96xf32>
    %39 = arith.truncf %38 : vector<8x96xf32> to vector<8x96xbf16>
    %cst_14 = arith.constant dense<0.000000e+00> : vector<8x256xf32>
    %40 = tpu.matmul %39, %6, %cst_14 {dimension_numbers = #tpu.dot_dimension_numbers<[1], [0], [0], [1], [0, 0, 1, 1], [], []>} : vector<8x96xbf16>, vector<96x256xbf16>, vector<8x256xf32> -> vector<8x256xf32>
    %41 = vector.extract_strided_slice %40 {offsets = [0, 0], sizes = [8, 128], strides = [1, 1]} : vector<8x256xf32> to vector<8x128xf32>
    %42 = arith.addf %41, %9 : vector<8x128xf32>
    %43 = arith.negf %42 : vector<8x128xf32>
    %44 = math.exp %43 : vector<8x128xf32>
    %cst_15 = arith.constant 1.000000e+00 : f32
    %45 = vector.broadcast %cst_15 : f32 to vector<8x128xf32>
    %46 = arith.addf %45, %44 : vector<8x128xf32>
    %47 = arith.divf %45, %46 : vector<8x128xf32>
    %48 = math.tanh %42 : vector<8x128xf32>
    %49 = tpu.iota {dimensions = array<i32: 1>} : vector<8x128xi32>
    %c64_i32_16 = arith.constant 64 : i32
    %50 = vector.broadcast %c64_i32_16 : i32 to vector<8x128xi32>
    %51 = arith.cmpi sge, %49, %50 : vector<8x128xi32>
    %c96_i32_17 = arith.constant 96 : i32
    %52 = vector.broadcast %c96_i32_17 : i32 to vector<8x128xi32>
    %53 = arith.cmpi slt, %49, %52 : vector<8x128xi32>
    %54 = arith.andi %51, %53 : vector<8x128xi1>
    %55 = arith.select %54, %48, %47 : vector<8x128xi1>, vector<8x128xf32>
    %56 = vector.extract_strided_slice %55 {offsets = [0, 0], sizes = [8, 32], strides = [1, 1]} : vector<8x128xf32> to vector<8x32xf32>
    %57 = vector.extract_strided_slice %55 {offsets = [0, 32], sizes = [8, 32], strides = [1, 1]} : vector<8x128xf32> to vector<8x32xf32>
    %58 = vector.extract_strided_slice %55 {offsets = [0, 64], sizes = [8, 32], strides = [1, 1]} : vector<8x128xf32> to vector<8x32xf32>
    %59 = vector.extract_strided_slice %55 {offsets = [0, 96], sizes = [8, 32], strides = [1, 1]} : vector<8x128xf32> to vector<8x32xf32>
    %60 = arith.mulf %57, %12 : vector<8x32xf32>
    %61 = arith.mulf %56, %58 : vector<8x32xf32>
    %62 = arith.addf %60, %61 : vector<8x32xf32>
    %63 = math.tanh %62 : vector<8x32xf32>
    %64 = arith.mulf %59, %63 : vector<8x32xf32>
    %65 = vector.extract_strided_slice %40 {offsets = [0, 128], sizes = [8, 128], strides = [1, 1]} : vector<8x256xf32> to vector<8x128xf32>
    %66 = vector.extract_strided_slice %5 {offsets = [8, 0], sizes = [8, 128], strides = [1, 1]} : vector<64x128xf32> to vector<8x128xf32>
    %67 = arith.addf %66, %65 : vector<8x128xf32>
    %68 = arith.negf %67 : vector<8x128xf32>
    %69 = math.exp %68 : vector<8x128xf32>
    %cst_18 = arith.constant 1.000000e+00 : f32
    %70 = vector.broadcast %cst_18 : f32 to vector<8x128xf32>
    %71 = arith.addf %70, %69 : vector<8x128xf32>
    %72 = arith.divf %70, %71 : vector<8x128xf32>
    %73 = math.tanh %67 : vector<8x128xf32>
    %74 = tpu.iota {dimensions = array<i32: 1>} : vector<8x128xi32>
    %c64_i32_19 = arith.constant 64 : i32
    %75 = vector.broadcast %c64_i32_19 : i32 to vector<8x128xi32>
    %76 = arith.cmpi sge, %74, %75 : vector<8x128xi32>
    %c96_i32_20 = arith.constant 96 : i32
    %77 = vector.broadcast %c96_i32_20 : i32 to vector<8x128xi32>
    %78 = arith.cmpi slt, %74, %77 : vector<8x128xi32>
    %79 = arith.andi %76, %78 : vector<8x128xi1>
    %80 = arith.select %79, %73, %72 : vector<8x128xi1>, vector<8x128xf32>
    %81 = vector.extract_strided_slice %80 {offsets = [0, 0], sizes = [8, 32], strides = [1, 1]} : vector<8x128xf32> to vector<8x32xf32>
    %82 = vector.extract_strided_slice %80 {offsets = [0, 32], sizes = [8, 32], strides = [1, 1]} : vector<8x128xf32> to vector<8x32xf32>
    %83 = vector.extract_strided_slice %80 {offsets = [0, 64], sizes = [8, 32], strides = [1, 1]} : vector<8x128xf32> to vector<8x32xf32>
    %84 = vector.extract_strided_slice %80 {offsets = [0, 96], sizes = [8, 32], strides = [1, 1]} : vector<8x128xf32> to vector<8x32xf32>
    %85 = arith.mulf %82, %35 : vector<8x32xf32>
    %86 = arith.mulf %81, %83 : vector<8x32xf32>
    %87 = arith.addf %85, %86 : vector<8x32xf32>
    %88 = math.tanh %87 : vector<8x32xf32>
    %89 = arith.mulf %84, %88 : vector<8x32xf32>
    %90 = tpu.concatenate %89, %64, %89 in 1 : vector<8x32xf32>, vector<8x32xf32>, vector<8x32xf32> -> vector<8x96xf32>
    %91 = arith.truncf %90 : vector<8x96xf32> to vector<8x96xbf16>
    %cst_21 = arith.constant dense<0.000000e+00> : vector<8x256xf32>
    %92 = tpu.matmul %91, %6, %cst_21 {dimension_numbers = #tpu.dot_dimension_numbers<[1], [0], [0], [1], [0, 0, 1, 1], [], []>} : vector<8x96xbf16>, vector<96x256xbf16>, vector<8x256xf32> -> vector<8x256xf32>
    %93 = vector.extract_strided_slice %92 {offsets = [0, 0], sizes = [8, 128], strides = [1, 1]} : vector<8x256xf32> to vector<8x128xf32>
    %94 = arith.addf %93, %9 : vector<8x128xf32>
    %95 = arith.negf %94 : vector<8x128xf32>
    %96 = math.exp %95 : vector<8x128xf32>
    %cst_22 = arith.constant 1.000000e+00 : f32
    %97 = vector.broadcast %cst_22 : f32 to vector<8x128xf32>
    %98 = arith.addf %97, %96 : vector<8x128xf32>
    %99 = arith.divf %97, %98 : vector<8x128xf32>
    %100 = math.tanh %94 : vector<8x128xf32>
    %101 = tpu.iota {dimensions = array<i32: 1>} : vector<8x128xi32>
    %c64_i32_23 = arith.constant 64 : i32
    %102 = vector.broadcast %c64_i32_23 : i32 to vector<8x128xi32>
    %103 = arith.cmpi sge, %101, %102 : vector<8x128xi32>
    %c96_i32_24 = arith.constant 96 : i32
    %104 = vector.broadcast %c96_i32_24 : i32 to vector<8x128xi32>
    %105 = arith.cmpi slt, %101, %104 : vector<8x128xi32>
    %106 = arith.andi %103, %105 : vector<8x128xi1>
    %107 = arith.select %106, %100, %99 : vector<8x128xi1>, vector<8x128xf32>
    %108 = vector.extract_strided_slice %107 {offsets = [0, 0], sizes = [8, 32], strides = [1, 1]} : vector<8x128xf32> to vector<8x32xf32>
    %109 = vector.extract_strided_slice %107 {offsets = [0, 32], sizes = [8, 32], strides = [1, 1]} : vector<8x128xf32> to vector<8x32xf32>
    %110 = vector.extract_strided_slice %107 {offsets = [0, 64], sizes = [8, 32], strides = [1, 1]} : vector<8x128xf32> to vector<8x32xf32>
    %111 = vector.extract_strided_slice %107 {offsets = [0, 96], sizes = [8, 32], strides = [1, 1]} : vector<8x128xf32> to vector<8x32xf32>
    %112 = arith.mulf %109, %62 : vector<8x32xf32>
    %113 = arith.mulf %108, %110 : vector<8x32xf32>
    %114 = arith.addf %112, %113 : vector<8x32xf32>
    %115 = math.tanh %114 : vector<8x32xf32>
    %116 = arith.mulf %111, %115 : vector<8x32xf32>
    %117 = vector.extract_strided_slice %92 {offsets = [0, 128], sizes = [8, 128], strides = [1, 1]} : vector<8x256xf32> to vector<8x128xf32>
    %118 = vector.extract_strided_slice %5 {offsets = [16, 0], sizes = [8, 128], strides = [1, 1]} : vector<64x128xf32> to vector<8x128xf32>
    %119 = arith.addf %118, %117 : vector<8x128xf32>
    %120 = arith.negf %119 : vector<8x128xf32>
    %121 = math.exp %120 : vector<8x128xf32>
    %cst_25 = arith.constant 1.000000e+00 : f32
    %122 = vector.broadcast %cst_25 : f32 to vector<8x128xf32>
    %123 = arith.addf %122, %121 : vector<8x128xf32>
    %124 = arith.divf %122, %123 : vector<8x128xf32>
    %125 = math.tanh %119 : vector<8x128xf32>
    %126 = tpu.iota {dimensions = array<i32: 1>} : vector<8x128xi32>
    %c64_i32_26 = arith.constant 64 : i32
    %127 = vector.broadcast %c64_i32_26 : i32 to vector<8x128xi32>
    %128 = arith.cmpi sge, %126, %127 : vector<8x128xi32>
    %c96_i32_27 = arith.constant 96 : i32
    %129 = vector.broadcast %c96_i32_27 : i32 to vector<8x128xi32>
    %130 = arith.cmpi slt, %126, %129 : vector<8x128xi32>
    %131 = arith.andi %128, %130 : vector<8x128xi1>
    %132 = arith.select %131, %125, %124 : vector<8x128xi1>, vector<8x128xf32>
    %133 = vector.extract_strided_slice %132 {offsets = [0, 0], sizes = [8, 32], strides = [1, 1]} : vector<8x128xf32> to vector<8x32xf32>
    %134 = vector.extract_strided_slice %132 {offsets = [0, 32], sizes = [8, 32], strides = [1, 1]} : vector<8x128xf32> to vector<8x32xf32>
    %135 = vector.extract_strided_slice %132 {offsets = [0, 64], sizes = [8, 32], strides = [1, 1]} : vector<8x128xf32> to vector<8x32xf32>
    %136 = vector.extract_strided_slice %132 {offsets = [0, 96], sizes = [8, 32], strides = [1, 1]} : vector<8x128xf32> to vector<8x32xf32>
    %137 = arith.mulf %134, %87 : vector<8x32xf32>
    %138 = arith.mulf %133, %135 : vector<8x32xf32>
    %139 = arith.addf %137, %138 : vector<8x32xf32>
    %140 = math.tanh %139 : vector<8x32xf32>
    %141 = arith.mulf %136, %140 : vector<8x32xf32>
    %142 = tpu.concatenate %141, %116, %141 in 1 : vector<8x32xf32>, vector<8x32xf32>, vector<8x32xf32> -> vector<8x96xf32>
    %143 = arith.truncf %142 : vector<8x96xf32> to vector<8x96xbf16>
    %cst_28 = arith.constant dense<0.000000e+00> : vector<8x256xf32>
    %144 = tpu.matmul %143, %6, %cst_28 {dimension_numbers = #tpu.dot_dimension_numbers<[1], [0], [0], [1], [0, 0, 1, 1], [], []>} : vector<8x96xbf16>, vector<96x256xbf16>, vector<8x256xf32> -> vector<8x256xf32>
    %145 = vector.extract_strided_slice %144 {offsets = [0, 0], sizes = [8, 128], strides = [1, 1]} : vector<8x256xf32> to vector<8x128xf32>
    %146 = arith.addf %145, %9 : vector<8x128xf32>
    %147 = arith.negf %146 : vector<8x128xf32>
    %148 = math.exp %147 : vector<8x128xf32>
    %cst_29 = arith.constant 1.000000e+00 : f32
    %149 = vector.broadcast %cst_29 : f32 to vector<8x128xf32>
    %150 = arith.addf %149, %148 : vector<8x128xf32>
    %151 = arith.divf %149, %150 : vector<8x128xf32>
    %152 = math.tanh %146 : vector<8x128xf32>
    %153 = tpu.iota {dimensions = array<i32: 1>} : vector<8x128xi32>
    %c64_i32_30 = arith.constant 64 : i32
    %154 = vector.broadcast %c64_i32_30 : i32 to vector<8x128xi32>
    %155 = arith.cmpi sge, %153, %154 : vector<8x128xi32>
    %c96_i32_31 = arith.constant 96 : i32
    %156 = vector.broadcast %c96_i32_31 : i32 to vector<8x128xi32>
    %157 = arith.cmpi slt, %153, %156 : vector<8x128xi32>
    %158 = arith.andi %155, %157 : vector<8x128xi1>
    %159 = arith.select %158, %152, %151 : vector<8x128xi1>, vector<8x128xf32>
    %160 = vector.extract_strided_slice %159 {offsets = [0, 0], sizes = [8, 32], strides = [1, 1]} : vector<8x128xf32> to vector<8x32xf32>
    %161 = vector.extract_strided_slice %159 {offsets = [0, 32], sizes = [8, 32], strides = [1, 1]} : vector<8x128xf32> to vector<8x32xf32>
    %162 = vector.extract_strided_slice %159 {offsets = [0, 64], sizes = [8, 32], strides = [1, 1]} : vector<8x128xf32> to vector<8x32xf32>
    %163 = vector.extract_strided_slice %159 {offsets = [0, 96], sizes = [8, 32], strides = [1, 1]} : vector<8x128xf32> to vector<8x32xf32>
    %164 = arith.mulf %161, %114 : vector<8x32xf32>
    %165 = arith.mulf %160, %162 : vector<8x32xf32>
    %166 = arith.addf %164, %165 : vector<8x32xf32>
    %167 = math.tanh %166 : vector<8x32xf32>
    %168 = arith.mulf %163, %167 : vector<8x32xf32>
    %169 = vector.extract_strided_slice %144 {offsets = [0, 128], sizes = [8, 128], strides = [1, 1]} : vector<8x256xf32> to vector<8x128xf32>
    %170 = vector.extract_strided_slice %5 {offsets = [24, 0], sizes = [8, 128], strides = [1, 1]} : vector<64x128xf32> to vector<8x128xf32>
    %171 = arith.addf %170, %169 : vector<8x128xf32>
    %172 = arith.negf %171 : vector<8x128xf32>
    %173 = math.exp %172 : vector<8x128xf32>
    %cst_32 = arith.constant 1.000000e+00 : f32
    %174 = vector.broadcast %cst_32 : f32 to vector<8x128xf32>
    %175 = arith.addf %174, %173 : vector<8x128xf32>
    %176 = arith.divf %174, %175 : vector<8x128xf32>
    %177 = math.tanh %171 : vector<8x128xf32>
    %178 = tpu.iota {dimensions = array<i32: 1>} : vector<8x128xi32>
    %c64_i32_33 = arith.constant 64 : i32
    %179 = vector.broadcast %c64_i32_33 : i32 to vector<8x128xi32>
    %180 = arith.cmpi sge, %178, %179 : vector<8x128xi32>
    %c96_i32_34 = arith.constant 96 : i32
    %181 = vector.broadcast %c96_i32_34 : i32 to vector<8x128xi32>
    %182 = arith.cmpi slt, %178, %181 : vector<8x128xi32>
    %183 = arith.andi %180, %182 : vector<8x128xi1>
    %184 = arith.select %183, %177, %176 : vector<8x128xi1>, vector<8x128xf32>
    %185 = vector.extract_strided_slice %184 {offsets = [0, 0], sizes = [8, 32], strides = [1, 1]} : vector<8x128xf32> to vector<8x32xf32>
    %186 = vector.extract_strided_slice %184 {offsets = [0, 32], sizes = [8, 32], strides = [1, 1]} : vector<8x128xf32> to vector<8x32xf32>
    %187 = vector.extract_strided_slice %184 {offsets = [0, 64], sizes = [8, 32], strides = [1, 1]} : vector<8x128xf32> to vector<8x32xf32>
    %188 = vector.extract_strided_slice %184 {offsets = [0, 96], sizes = [8, 32], strides = [1, 1]} : vector<8x128xf32> to vector<8x32xf32>
    %189 = arith.mulf %186, %139 : vector<8x32xf32>
    %190 = arith.mulf %185, %187 : vector<8x32xf32>
    %191 = arith.addf %189, %190 : vector<8x32xf32>
    %192 = math.tanh %191 : vector<8x32xf32>
    %193 = arith.mulf %188, %192 : vector<8x32xf32>
    %194 = tpu.concatenate %193, %168, %193 in 1 : vector<8x32xf32>, vector<8x32xf32>, vector<8x32xf32> -> vector<8x96xf32>
    %195 = arith.truncf %194 : vector<8x96xf32> to vector<8x96xbf16>
    %cst_35 = arith.constant dense<0.000000e+00> : vector<8x256xf32>
    %196 = tpu.matmul %195, %6, %cst_35 {dimension_numbers = #tpu.dot_dimension_numbers<[1], [0], [0], [1], [0, 0, 1, 1], [], []>} : vector<8x96xbf16>, vector<96x256xbf16>, vector<8x256xf32> -> vector<8x256xf32>
    %197 = vector.extract_strided_slice %196 {offsets = [0, 0], sizes = [8, 128], strides = [1, 1]} : vector<8x256xf32> to vector<8x128xf32>
    %198 = arith.addf %197, %9 : vector<8x128xf32>
    %199 = arith.negf %198 : vector<8x128xf32>
    %200 = math.exp %199 : vector<8x128xf32>
    %cst_36 = arith.constant 1.000000e+00 : f32
    %201 = vector.broadcast %cst_36 : f32 to vector<8x128xf32>
    %202 = arith.addf %201, %200 : vector<8x128xf32>
    %203 = arith.divf %201, %202 : vector<8x128xf32>
    %204 = math.tanh %198 : vector<8x128xf32>
    %205 = tpu.iota {dimensions = array<i32: 1>} : vector<8x128xi32>
    %c64_i32_37 = arith.constant 64 : i32
    %206 = vector.broadcast %c64_i32_37 : i32 to vector<8x128xi32>
    %207 = arith.cmpi sge, %205, %206 : vector<8x128xi32>
    %c96_i32_38 = arith.constant 96 : i32
    %208 = vector.broadcast %c96_i32_38 : i32 to vector<8x128xi32>
    %209 = arith.cmpi slt, %205, %208 : vector<8x128xi32>
    %210 = arith.andi %207, %209 : vector<8x128xi1>
    %211 = arith.select %210, %204, %203 : vector<8x128xi1>, vector<8x128xf32>
    %212 = vector.extract_strided_slice %211 {offsets = [0, 0], sizes = [8, 32], strides = [1, 1]} : vector<8x128xf32> to vector<8x32xf32>
    %213 = vector.extract_strided_slice %211 {offsets = [0, 32], sizes = [8, 32], strides = [1, 1]} : vector<8x128xf32> to vector<8x32xf32>
    %214 = vector.extract_strided_slice %211 {offsets = [0, 64], sizes = [8, 32], strides = [1, 1]} : vector<8x128xf32> to vector<8x32xf32>
    %215 = vector.extract_strided_slice %211 {offsets = [0, 96], sizes = [8, 32], strides = [1, 1]} : vector<8x128xf32> to vector<8x32xf32>
    %216 = arith.mulf %213, %166 : vector<8x32xf32>
    %217 = arith.mulf %212, %214 : vector<8x32xf32>
    %218 = arith.addf %216, %217 : vector<8x32xf32>
    %219 = math.tanh %218 : vector<8x32xf32>
    %220 = arith.mulf %215, %219 : vector<8x32xf32>
    %221 = vector.extract_strided_slice %196 {offsets = [0, 128], sizes = [8, 128], strides = [1, 1]} : vector<8x256xf32> to vector<8x128xf32>
    %222 = vector.extract_strided_slice %5 {offsets = [32, 0], sizes = [8, 128], strides = [1, 1]} : vector<64x128xf32> to vector<8x128xf32>
    %223 = arith.addf %222, %221 : vector<8x128xf32>
    %224 = arith.negf %223 : vector<8x128xf32>
    %225 = math.exp %224 : vector<8x128xf32>
    %cst_39 = arith.constant 1.000000e+00 : f32
    %226 = vector.broadcast %cst_39 : f32 to vector<8x128xf32>
    %227 = arith.addf %226, %225 : vector<8x128xf32>
    %228 = arith.divf %226, %227 : vector<8x128xf32>
    %229 = math.tanh %223 : vector<8x128xf32>
    %230 = tpu.iota {dimensions = array<i32: 1>} : vector<8x128xi32>
    %c64_i32_40 = arith.constant 64 : i32
    %231 = vector.broadcast %c64_i32_40 : i32 to vector<8x128xi32>
    %232 = arith.cmpi sge, %230, %231 : vector<8x128xi32>
    %c96_i32_41 = arith.constant 96 : i32
    %233 = vector.broadcast %c96_i32_41 : i32 to vector<8x128xi32>
    %234 = arith.cmpi slt, %230, %233 : vector<8x128xi32>
    %235 = arith.andi %232, %234 : vector<8x128xi1>
    %236 = arith.select %235, %229, %228 : vector<8x128xi1>, vector<8x128xf32>
    %237 = vector.extract_strided_slice %236 {offsets = [0, 0], sizes = [8, 32], strides = [1, 1]} : vector<8x128xf32> to vector<8x32xf32>
    %238 = vector.extract_strided_slice %236 {offsets = [0, 32], sizes = [8, 32], strides = [1, 1]} : vector<8x128xf32> to vector<8x32xf32>
    %239 = vector.extract_strided_slice %236 {offsets = [0, 64], sizes = [8, 32], strides = [1, 1]} : vector<8x128xf32> to vector<8x32xf32>
    %240 = vector.extract_strided_slice %236 {offsets = [0, 96], sizes = [8, 32], strides = [1, 1]} : vector<8x128xf32> to vector<8x32xf32>
    %241 = arith.mulf %238, %191 : vector<8x32xf32>
    %242 = arith.mulf %237, %239 : vector<8x32xf32>
    %243 = arith.addf %241, %242 : vector<8x32xf32>
    %244 = math.tanh %243 : vector<8x32xf32>
    %245 = arith.mulf %240, %244 : vector<8x32xf32>
    %246 = tpu.concatenate %245, %220, %245 in 1 : vector<8x32xf32>, vector<8x32xf32>, vector<8x32xf32> -> vector<8x96xf32>
    %247 = arith.truncf %246 : vector<8x96xf32> to vector<8x96xbf16>
    %cst_42 = arith.constant dense<0.000000e+00> : vector<8x256xf32>
    %248 = tpu.matmul %247, %6, %cst_42 {dimension_numbers = #tpu.dot_dimension_numbers<[1], [0], [0], [1], [0, 0, 1, 1], [], []>} : vector<8x96xbf16>, vector<96x256xbf16>, vector<8x256xf32> -> vector<8x256xf32>
    %249 = vector.extract_strided_slice %248 {offsets = [0, 0], sizes = [8, 128], strides = [1, 1]} : vector<8x256xf32> to vector<8x128xf32>
    %250 = arith.addf %249, %9 : vector<8x128xf32>
    %251 = arith.negf %250 : vector<8x128xf32>
    %252 = math.exp %251 : vector<8x128xf32>
    %cst_43 = arith.constant 1.000000e+00 : f32
    %253 = vector.broadcast %cst_43 : f32 to vector<8x128xf32>
    %254 = arith.addf %253, %252 : vector<8x128xf32>
    %255 = arith.divf %253, %254 : vector<8x128xf32>
    %256 = math.tanh %250 : vector<8x128xf32>
    %257 = tpu.iota {dimensions = array<i32: 1>} : vector<8x128xi32>
    %c64_i32_44 = arith.constant 64 : i32
    %258 = vector.broadcast %c64_i32_44 : i32 to vector<8x128xi32>
    %259 = arith.cmpi sge, %257, %258 : vector<8x128xi32>
    %c96_i32_45 = arith.constant 96 : i32
    %260 = vector.broadcast %c96_i32_45 : i32 to vector<8x128xi32>
    %261 = arith.cmpi slt, %257, %260 : vector<8x128xi32>
    %262 = arith.andi %259, %261 : vector<8x128xi1>
    %263 = arith.select %262, %256, %255 : vector<8x128xi1>, vector<8x128xf32>
    %264 = vector.extract_strided_slice %263 {offsets = [0, 0], sizes = [8, 32], strides = [1, 1]} : vector<8x128xf32> to vector<8x32xf32>
    %265 = vector.extract_strided_slice %263 {offsets = [0, 32], sizes = [8, 32], strides = [1, 1]} : vector<8x128xf32> to vector<8x32xf32>
    %266 = vector.extract_strided_slice %263 {offsets = [0, 64], sizes = [8, 32], strides = [1, 1]} : vector<8x128xf32> to vector<8x32xf32>
    %267 = vector.extract_strided_slice %263 {offsets = [0, 96], sizes = [8, 32], strides = [1, 1]} : vector<8x128xf32> to vector<8x32xf32>
    %268 = arith.mulf %265, %218 : vector<8x32xf32>
    %269 = arith.mulf %264, %266 : vector<8x32xf32>
    %270 = arith.addf %268, %269 : vector<8x32xf32>
    %271 = math.tanh %270 : vector<8x32xf32>
    %272 = arith.mulf %267, %271 : vector<8x32xf32>
    %273 = vector.extract_strided_slice %248 {offsets = [0, 128], sizes = [8, 128], strides = [1, 1]} : vector<8x256xf32> to vector<8x128xf32>
    %274 = vector.extract_strided_slice %5 {offsets = [40, 0], sizes = [8, 128], strides = [1, 1]} : vector<64x128xf32> to vector<8x128xf32>
    %275 = arith.addf %274, %273 : vector<8x128xf32>
    %276 = arith.negf %275 : vector<8x128xf32>
    %277 = math.exp %276 : vector<8x128xf32>
    %cst_46 = arith.constant 1.000000e+00 : f32
    %278 = vector.broadcast %cst_46 : f32 to vector<8x128xf32>
    %279 = arith.addf %278, %277 : vector<8x128xf32>
    %280 = arith.divf %278, %279 : vector<8x128xf32>
    %281 = math.tanh %275 : vector<8x128xf32>
    %282 = tpu.iota {dimensions = array<i32: 1>} : vector<8x128xi32>
    %c64_i32_47 = arith.constant 64 : i32
    %283 = vector.broadcast %c64_i32_47 : i32 to vector<8x128xi32>
    %284 = arith.cmpi sge, %282, %283 : vector<8x128xi32>
    %c96_i32_48 = arith.constant 96 : i32
    %285 = vector.broadcast %c96_i32_48 : i32 to vector<8x128xi32>
    %286 = arith.cmpi slt, %282, %285 : vector<8x128xi32>
    %287 = arith.andi %284, %286 : vector<8x128xi1>
    %288 = arith.select %287, %281, %280 : vector<8x128xi1>, vector<8x128xf32>
    %289 = vector.extract_strided_slice %288 {offsets = [0, 0], sizes = [8, 32], strides = [1, 1]} : vector<8x128xf32> to vector<8x32xf32>
    %290 = vector.extract_strided_slice %288 {offsets = [0, 32], sizes = [8, 32], strides = [1, 1]} : vector<8x128xf32> to vector<8x32xf32>
    %291 = vector.extract_strided_slice %288 {offsets = [0, 64], sizes = [8, 32], strides = [1, 1]} : vector<8x128xf32> to vector<8x32xf32>
    %292 = vector.extract_strided_slice %288 {offsets = [0, 96], sizes = [8, 32], strides = [1, 1]} : vector<8x128xf32> to vector<8x32xf32>
    %293 = arith.mulf %290, %243 : vector<8x32xf32>
    %294 = arith.mulf %289, %291 : vector<8x32xf32>
    %295 = arith.addf %293, %294 : vector<8x32xf32>
    %296 = math.tanh %295 : vector<8x32xf32>
    %297 = arith.mulf %292, %296 : vector<8x32xf32>
    %298 = tpu.concatenate %297, %272, %297 in 1 : vector<8x32xf32>, vector<8x32xf32>, vector<8x32xf32> -> vector<8x96xf32>
    %299 = arith.truncf %298 : vector<8x96xf32> to vector<8x96xbf16>
    %cst_49 = arith.constant dense<0.000000e+00> : vector<8x256xf32>
    %300 = tpu.matmul %299, %6, %cst_49 {dimension_numbers = #tpu.dot_dimension_numbers<[1], [0], [0], [1], [0, 0, 1, 1], [], []>} : vector<8x96xbf16>, vector<96x256xbf16>, vector<8x256xf32> -> vector<8x256xf32>
    %301 = vector.extract_strided_slice %300 {offsets = [0, 0], sizes = [8, 128], strides = [1, 1]} : vector<8x256xf32> to vector<8x128xf32>
    %302 = arith.addf %301, %9 : vector<8x128xf32>
    %303 = arith.negf %302 : vector<8x128xf32>
    %304 = math.exp %303 : vector<8x128xf32>
    %cst_50 = arith.constant 1.000000e+00 : f32
    %305 = vector.broadcast %cst_50 : f32 to vector<8x128xf32>
    %306 = arith.addf %305, %304 : vector<8x128xf32>
    %307 = arith.divf %305, %306 : vector<8x128xf32>
    %308 = math.tanh %302 : vector<8x128xf32>
    %309 = tpu.iota {dimensions = array<i32: 1>} : vector<8x128xi32>
    %c64_i32_51 = arith.constant 64 : i32
    %310 = vector.broadcast %c64_i32_51 : i32 to vector<8x128xi32>
    %311 = arith.cmpi sge, %309, %310 : vector<8x128xi32>
    %c96_i32_52 = arith.constant 96 : i32
    %312 = vector.broadcast %c96_i32_52 : i32 to vector<8x128xi32>
    %313 = arith.cmpi slt, %309, %312 : vector<8x128xi32>
    %314 = arith.andi %311, %313 : vector<8x128xi1>
    %315 = arith.select %314, %308, %307 : vector<8x128xi1>, vector<8x128xf32>
    %316 = vector.extract_strided_slice %315 {offsets = [0, 0], sizes = [8, 32], strides = [1, 1]} : vector<8x128xf32> to vector<8x32xf32>
    %317 = vector.extract_strided_slice %315 {offsets = [0, 32], sizes = [8, 32], strides = [1, 1]} : vector<8x128xf32> to vector<8x32xf32>
    %318 = vector.extract_strided_slice %315 {offsets = [0, 64], sizes = [8, 32], strides = [1, 1]} : vector<8x128xf32> to vector<8x32xf32>
    %319 = vector.extract_strided_slice %315 {offsets = [0, 96], sizes = [8, 32], strides = [1, 1]} : vector<8x128xf32> to vector<8x32xf32>
    %320 = arith.mulf %317, %270 : vector<8x32xf32>
    %321 = arith.mulf %316, %318 : vector<8x32xf32>
    %322 = arith.addf %320, %321 : vector<8x32xf32>
    %323 = math.tanh %322 : vector<8x32xf32>
    %324 = arith.mulf %319, %323 : vector<8x32xf32>
    %325 = vector.extract_strided_slice %300 {offsets = [0, 128], sizes = [8, 128], strides = [1, 1]} : vector<8x256xf32> to vector<8x128xf32>
    %326 = vector.extract_strided_slice %5 {offsets = [48, 0], sizes = [8, 128], strides = [1, 1]} : vector<64x128xf32> to vector<8x128xf32>
    %327 = arith.addf %326, %325 : vector<8x128xf32>
    %328 = arith.negf %327 : vector<8x128xf32>
    %329 = math.exp %328 : vector<8x128xf32>
    %cst_53 = arith.constant 1.000000e+00 : f32
    %330 = vector.broadcast %cst_53 : f32 to vector<8x128xf32>
    %331 = arith.addf %330, %329 : vector<8x128xf32>
    %332 = arith.divf %330, %331 : vector<8x128xf32>
    %333 = math.tanh %327 : vector<8x128xf32>
    %334 = tpu.iota {dimensions = array<i32: 1>} : vector<8x128xi32>
    %c64_i32_54 = arith.constant 64 : i32
    %335 = vector.broadcast %c64_i32_54 : i32 to vector<8x128xi32>
    %336 = arith.cmpi sge, %334, %335 : vector<8x128xi32>
    %c96_i32_55 = arith.constant 96 : i32
    %337 = vector.broadcast %c96_i32_55 : i32 to vector<8x128xi32>
    %338 = arith.cmpi slt, %334, %337 : vector<8x128xi32>
    %339 = arith.andi %336, %338 : vector<8x128xi1>
    %340 = arith.select %339, %333, %332 : vector<8x128xi1>, vector<8x128xf32>
    %341 = vector.extract_strided_slice %340 {offsets = [0, 0], sizes = [8, 32], strides = [1, 1]} : vector<8x128xf32> to vector<8x32xf32>
    %342 = vector.extract_strided_slice %340 {offsets = [0, 32], sizes = [8, 32], strides = [1, 1]} : vector<8x128xf32> to vector<8x32xf32>
    %343 = vector.extract_strided_slice %340 {offsets = [0, 64], sizes = [8, 32], strides = [1, 1]} : vector<8x128xf32> to vector<8x32xf32>
    %344 = vector.extract_strided_slice %340 {offsets = [0, 96], sizes = [8, 32], strides = [1, 1]} : vector<8x128xf32> to vector<8x32xf32>
    %345 = arith.mulf %342, %295 : vector<8x32xf32>
    %346 = arith.mulf %341, %343 : vector<8x32xf32>
    %347 = arith.addf %345, %346 : vector<8x32xf32>
    %348 = math.tanh %347 : vector<8x32xf32>
    %349 = arith.mulf %344, %348 : vector<8x32xf32>
    %350 = tpu.concatenate %349, %324, %349 in 1 : vector<8x32xf32>, vector<8x32xf32>, vector<8x32xf32> -> vector<8x96xf32>
    %351 = arith.truncf %350 : vector<8x96xf32> to vector<8x96xbf16>
    %cst_56 = arith.constant dense<0.000000e+00> : vector<8x256xf32>
    %352 = tpu.matmul %351, %6, %cst_56 {dimension_numbers = #tpu.dot_dimension_numbers<[1], [0], [0], [1], [0, 0, 1, 1], [], []>} : vector<8x96xbf16>, vector<96x256xbf16>, vector<8x256xf32> -> vector<8x256xf32>
    %353 = vector.extract_strided_slice %352 {offsets = [0, 0], sizes = [8, 128], strides = [1, 1]} : vector<8x256xf32> to vector<8x128xf32>
    %354 = arith.addf %353, %9 : vector<8x128xf32>
    %355 = arith.negf %354 : vector<8x128xf32>
    %356 = math.exp %355 : vector<8x128xf32>
    %cst_57 = arith.constant 1.000000e+00 : f32
    %357 = vector.broadcast %cst_57 : f32 to vector<8x128xf32>
    %358 = arith.addf %357, %356 : vector<8x128xf32>
    %359 = arith.divf %357, %358 : vector<8x128xf32>
    %360 = math.tanh %354 : vector<8x128xf32>
    %361 = tpu.iota {dimensions = array<i32: 1>} : vector<8x128xi32>
    %c64_i32_58 = arith.constant 64 : i32
    %362 = vector.broadcast %c64_i32_58 : i32 to vector<8x128xi32>
    %363 = arith.cmpi sge, %361, %362 : vector<8x128xi32>
    %c96_i32_59 = arith.constant 96 : i32
    %364 = vector.broadcast %c96_i32_59 : i32 to vector<8x128xi32>
    %365 = arith.cmpi slt, %361, %364 : vector<8x128xi32>
    %366 = arith.andi %363, %365 : vector<8x128xi1>
    %367 = arith.select %366, %360, %359 : vector<8x128xi1>, vector<8x128xf32>
    %368 = vector.extract_strided_slice %367 {offsets = [0, 0], sizes = [8, 32], strides = [1, 1]} : vector<8x128xf32> to vector<8x32xf32>
    %369 = vector.extract_strided_slice %367 {offsets = [0, 32], sizes = [8, 32], strides = [1, 1]} : vector<8x128xf32> to vector<8x32xf32>
    %370 = vector.extract_strided_slice %367 {offsets = [0, 64], sizes = [8, 32], strides = [1, 1]} : vector<8x128xf32> to vector<8x32xf32>
    %371 = vector.extract_strided_slice %367 {offsets = [0, 96], sizes = [8, 32], strides = [1, 1]} : vector<8x128xf32> to vector<8x32xf32>
    %372 = arith.mulf %369, %322 : vector<8x32xf32>
    %373 = arith.mulf %368, %370 : vector<8x32xf32>
    %374 = arith.addf %372, %373 : vector<8x32xf32>
    %375 = math.tanh %374 : vector<8x32xf32>
    %376 = arith.mulf %371, %375 : vector<8x32xf32>
    %377 = vector.extract_strided_slice %352 {offsets = [0, 128], sizes = [8, 128], strides = [1, 1]} : vector<8x256xf32> to vector<8x128xf32>
    %378 = vector.extract_strided_slice %5 {offsets = [56, 0], sizes = [8, 128], strides = [1, 1]} : vector<64x128xf32> to vector<8x128xf32>
    %379 = arith.addf %378, %377 : vector<8x128xf32>
    %380 = arith.negf %379 : vector<8x128xf32>
    %381 = math.exp %380 : vector<8x128xf32>
    %cst_60 = arith.constant 1.000000e+00 : f32
    %382 = vector.broadcast %cst_60 : f32 to vector<8x128xf32>
    %383 = arith.addf %382, %381 : vector<8x128xf32>
    %384 = arith.divf %382, %383 : vector<8x128xf32>
    %385 = math.tanh %379 : vector<8x128xf32>
    %386 = tpu.iota {dimensions = array<i32: 1>} : vector<8x128xi32>
    %c64_i32_61 = arith.constant 64 : i32
    %387 = vector.broadcast %c64_i32_61 : i32 to vector<8x128xi32>
    %388 = arith.cmpi sge, %386, %387 : vector<8x128xi32>
    %c96_i32_62 = arith.constant 96 : i32
    %389 = vector.broadcast %c96_i32_62 : i32 to vector<8x128xi32>
    %390 = arith.cmpi slt, %386, %389 : vector<8x128xi32>
    %391 = arith.andi %388, %390 : vector<8x128xi1>
    %392 = arith.select %391, %385, %384 : vector<8x128xi1>, vector<8x128xf32>
    %393 = vector.extract_strided_slice %392 {offsets = [0, 0], sizes = [8, 32], strides = [1, 1]} : vector<8x128xf32> to vector<8x32xf32>
    %394 = vector.extract_strided_slice %392 {offsets = [0, 32], sizes = [8, 32], strides = [1, 1]} : vector<8x128xf32> to vector<8x32xf32>
    %395 = vector.extract_strided_slice %392 {offsets = [0, 64], sizes = [8, 32], strides = [1, 1]} : vector<8x128xf32> to vector<8x32xf32>
    %396 = vector.extract_strided_slice %392 {offsets = [0, 96], sizes = [8, 32], strides = [1, 1]} : vector<8x128xf32> to vector<8x32xf32>
    %397 = arith.mulf %394, %347 : vector<8x32xf32>
    %398 = arith.mulf %393, %395 : vector<8x32xf32>
    %399 = arith.addf %397, %398 : vector<8x32xf32>
    %400 = math.tanh %399 : vector<8x32xf32>
    %401 = arith.mulf %396, %400 : vector<8x32xf32>
    %402 = tpu.concatenate %401, %376, %401 in 1 : vector<8x32xf32>, vector<8x32xf32>, vector<8x32xf32> -> vector<8x96xf32>
    %403 = arith.truncf %402 : vector<8x96xf32> to vector<8x96xbf16>
    %cst_63 = arith.constant dense<0.000000e+00> : vector<8x256xf32>
    %404 = tpu.matmul %403, %6, %cst_63 {dimension_numbers = #tpu.dot_dimension_numbers<[1], [0], [0], [1], [0, 0, 1, 1], [], []>} : vector<8x96xbf16>, vector<96x256xbf16>, vector<8x256xf32> -> vector<8x256xf32>
    %405 = vector.extract_strided_slice %404 {offsets = [0, 0], sizes = [8, 128], strides = [1, 1]} : vector<8x256xf32> to vector<8x128xf32>
    %406 = arith.addf %405, %9 : vector<8x128xf32>
    %407 = arith.negf %406 : vector<8x128xf32>
    %408 = math.exp %407 : vector<8x128xf32>
    %cst_64 = arith.constant 1.000000e+00 : f32
    %409 = vector.broadcast %cst_64 : f32 to vector<8x128xf32>
    %410 = arith.addf %409, %408 : vector<8x128xf32>
    %411 = arith.divf %409, %410 : vector<8x128xf32>
    %412 = math.tanh %406 : vector<8x128xf32>
    %413 = tpu.iota {dimensions = array<i32: 1>} : vector<8x128xi32>
    %c64_i32_65 = arith.constant 64 : i32
    %414 = vector.broadcast %c64_i32_65 : i32 to vector<8x128xi32>
    %415 = arith.cmpi sge, %413, %414 : vector<8x128xi32>
    %c96_i32_66 = arith.constant 96 : i32
    %416 = vector.broadcast %c96_i32_66 : i32 to vector<8x128xi32>
    %417 = arith.cmpi slt, %413, %416 : vector<8x128xi32>
    %418 = arith.andi %415, %417 : vector<8x128xi1>
    %419 = arith.select %418, %412, %411 : vector<8x128xi1>, vector<8x128xf32>
    %420 = vector.extract_strided_slice %419 {offsets = [0, 0], sizes = [8, 32], strides = [1, 1]} : vector<8x128xf32> to vector<8x32xf32>
    %421 = vector.extract_strided_slice %419 {offsets = [0, 32], sizes = [8, 32], strides = [1, 1]} : vector<8x128xf32> to vector<8x32xf32>
    %422 = vector.extract_strided_slice %419 {offsets = [0, 64], sizes = [8, 32], strides = [1, 1]} : vector<8x128xf32> to vector<8x32xf32>
    %423 = vector.extract_strided_slice %419 {offsets = [0, 96], sizes = [8, 32], strides = [1, 1]} : vector<8x128xf32> to vector<8x32xf32>
    %424 = arith.mulf %421, %374 : vector<8x32xf32>
    %425 = arith.mulf %420, %422 : vector<8x32xf32>
    %426 = arith.addf %424, %425 : vector<8x32xf32>
    %427 = math.tanh %426 : vector<8x32xf32>
    %428 = arith.mulf %423, %427 : vector<8x32xf32>
    %429 = tpu.concatenate %64, %116, %168, %220, %272, %324, %376, %428 in 0 : vector<8x32xf32>, vector<8x32xf32>, vector<8x32xf32>, vector<8x32xf32>, vector<8x32xf32>, vector<8x32xf32>, vector<8x32xf32>, vector<8x32xf32> -> vector<64x32xf32>
    %430 = arith.truncf %429 : vector<64x32xf32> to vector<64x32xbf16>
    %c0_67 = arith.constant 0 : index
    %c0_68 = arith.constant 0 : index
    %431 = vector.load %arg5[%c0_67, %c0_68] : memref<32x128xbf16, #tpu.memory_space<vmem>>, vector<32x128xbf16>
    %cst_69 = arith.constant dense<0.000000e+00> : vector<64x128xf32>
    %432 = tpu.matmul %430, %431, %cst_69 {dimension_numbers = #tpu.dot_dimension_numbers<[1], [0], [0], [1], [0, 0, 1, 1], [], []>} : vector<64x32xbf16>, vector<32x128xbf16>, vector<64x128xf32> -> vector<64x128xf32>
    %c0_70 = arith.constant 0 : index
    %c0_71 = arith.constant 0 : index
    %433 = vector.load %arg6[%c0_70, %c0_71] : memref<1x128xf32, #tpu.memory_space<vmem>>, vector<1x128xf32>
    %434 = vector.broadcast %433 : vector<1x128xf32> to vector<64x128xf32>
    %435 = arith.addf %432, %434 : vector<64x128xf32>
    %436 = math.tanh %435 : vector<64x128xf32>
    %c0_72 = arith.constant 0 : index
    %c0_73 = arith.constant 0 : index
    %437 = vector.load %arg7[%c0_72, %c0_73] : memref<64x128xf32, #tpu.memory_space<vmem>>, vector<64x128xf32>
    tpu.vector_store %arg7[%c0_72, %c0_73], %436 {strides = array<i32>} : memref<64x128xf32, #tpu.memory_space<vmem>>, vector<64x128xf32>,
    return
  }
}

</mosaic_0001>

<bundles_post_ra>
// kernel: tpu_custom_call.1
= control target key start
LH: loop header
LB: loop body
LE: loop exit
PB: predicated region body
PF: predicated region fallthrough
CT: control target
= control target key end

     0   :  { %12 = vsyncpa [#allocation3], 0  ;;  %s2052_s0 = inlined_call_operand.vmem [shape: bf16[64,8], index: 0, kind: input, shape index: {}]   ;;  %s2053_s1 = inlined_call_operand.vmem [shape: bf16[8,128], index: 1, kind: input, shape index: {}]   ;;  %s2054_s2 = inlined_call_operand.vmem [shape: f32[1,128], index: 2, kind: input, shape index: {}]   ;;  %s2055_s3 = inlined_call_operand.hbm [shape: bf16[96,256], index: 3, kind: input, shape index: {}]   ;;  %s2056_s4 = inlined_call_operand.vmem [shape: f32[1,128], index: 4, kind: input, shape index: {}]   ;;  %s2057_s5 = inlined_call_operand.vmem [shape: bf16[32,128], index: 5, kind: input, shape index: {}]   ;;  %s2058_s6 = inlined_call_operand.vmem [shape: f32[1,128], index: 6, kind: input, shape index: {}]   ;;  %s2059_s7 = inlined_call_operand.hbm [shape: f32[64,128], index: 7, kind: output, shape index: {}]  }
   0x1   :  { %13 = vsyncpa [#allocation4], 0  ;;  %s1583_s24 = smov [#allocation2]  }
   0x2   :  { %s25_s25 = sshll.u32 %s1583_s24, 4  ;;  %s26_s25 = int_to_ptr.vmem [resolvable:$true] %s25_s25 }
   0x3   :  { %s1547_s26 = scalar_lea.vmem %s26_s25, 1536  ;;  %p1552_p1 = scmp.lt.s32.totalorder %s26_s25, %s26_s25 }
   0x4   :  { %p1548_p0 = scmp.ne.s32.totalorder %s26_s25, %s1547_s26  ;;  %p1553_p2 = scmp.lt.s32.totalorder %s1547_s26, %s1547_s26 }
   0x6   :  { %p1554_p3 = por %p1553_p2, %p1552_p1 }
   0x8   :  { %p1555_p4 = pnand %p1554_p3, %p1548_p0 }
   0xa   :  { %1558 = shalt.err (!%p1555_p4)
}
   0xb   :  { %s1584_s27 = smov 128   ;;  %s1585_s28 = smov 8  }
   0xc   :  { %31 = dma.hbm_to_vmem [thread:$0]  %s2055_s3, 1536, %s26_s25, [#allocation3], %s1584_s27, %s1584_s27, %s1585_s28  }
   0xd   :  { %1579 = dma.done.wait [#allocation3], 1536  }
   0xe   :  { %1580 = vsyncadd [#allocation3], 4294965760  ;;  %vm91_vm0 = vcmask 1043456   ;;  %vm78_vm1 = vcmask 64512   ;;  %v50_v0 = vld [vmem:[%s2053_s1] sm:$0xf]  ;;  %v187_v11 = vlaneseq }
   0xf   :  { %1361 = vmatprep.subr.msk.bf16.mxu0 %vm91_vm0, %v50_v0  ;;  %v93_v1 = vsel %vm91_vm0, %v50_v0, 0  ;;  %v1370_v2 = vld [vmem:[%s2052_s0] sm:$0xff]   ;;  %v1371_v3 = vld [vmem:[%s2052_s0 + $0x8] sm:$0xff]   ;;  %s1586_s1 = smov 64   ;;  %s1587_s15 = smov 32   ;;  %v1588_v35 = vmov 0  }
  0x10   :  { %1336 = vmatpush3.bf16.msra.mxu0 %v93_v1  ;;  %1337 = vmatprep.mubr.msk.bf16.mxu0 %vm78_vm1, %v1370_v2  ;;  %v1653_v5 = vld [vmem:[%s2054_s2] ss:$0 sm:$0xff]  ;;  %v188_v12 = vand.u32 127, %v187_v11  ;;  %v1667_v22 = vld [vmem:[#allocation2 + $0x54] ss:$8 sps:$4 sm:$0xff]   ;;  %s1589_s16 = smov 96  }
  0x11   :  { %v1669_v23 = vld [vmem:[#allocation2 + $0x50] ss:$8 sps:$4 sm:$0xff]   ;;  %v1671_v24 = vld [vmem:[#allocation2 + $0x44] ss:$8 sps:$4 sm:$0xff]   ;;  %290 = vmatprep.subr.bf16.mxu1 %v1667_v22  ;;  %400 = vmatprep.subr.bf16.mxu0 %v1667_v22  ;;  %v1676_v25 = vld [vmem:[#allocation2 + $0x40] ss:$8 sps:$4 sm:$0xff]  }
  0x12   :  { %vm189_vm2 = vcmp.ge.s32.totalorder %v188_v12, 64  ;;  %vm190_vm3 = vcmp.lt.s32.totalorder %v188_v12, 96  ;;  %291 = vmatpush1.bf16.msra.mxu1 %v1669_v23  ;;  %v1680_v26 = vld [vmem:[#allocation2 + $0x34] ss:$8 sps:$4 sm:$0xff]   ;;  %v1684_v27 = vld [vmem:[#allocation2 + $0x30] ss:$8 sps:$4 sm:$0xff]   ;;  %318 = vmatprep.mubr.bf16.mxu1 %v1588_v35 }
  0x13   :  { %1338 = vmatmul.mubr.msk.bf16.vlgmr.msra.gmra.mxu0 %vm78_vm1, %v1371_v3  ;;  %vm1656_vm4 = vmand %vm189_vm2, %vm190_vm3  ;;  %292 = vmatprep.subr.bf16.mxu1 %v1671_v24  ;;  %v1688_v28 = vld [vmem:[#allocation2 + $0x24] ss:$8 sps:$4 sm:$0xff]   ;;  %v1693_v30 = vld [vmem:[#allocation2 + $0x20] ss:$8 sps:$4 sm:$0xff]   ;;  %vm217_vm5 = vcmask 261120   ;;  %vm219_vm6 = vcmask 523264  }
  0x14   :  { %401 = vmatpush1.bf16.msra.mxu0 %v1669_v23  ;;  %v1696_v31 = vld [vmem:[#allocation2 + $0x14] ss:$8 sps:$4 sm:$0xff]   ;;  %v1701_v32 = vld [vmem:[#allocation2 + $0x10] ss:$8 sps:$4 sm:$0xff]   ;;  %v1708_v33 = vld [vmem:[#allocation2 + $0x4] ss:$8 sps:$4 sm:$0xff]  }
  0x15   :  { %402 = vmatprep.subr.bf16.mxu0 %v1671_v24  ;;  %v1710_v34 = vld [vmem:[#allocation2] ss:$8 sps:$4 sm:$0xff]   ;;  %vm282_vm7 = vcmask 785408  }
  0x16   :  { %293 = vmatpush1.bf16.msra.mxu1 %v1676_v25  ;;  %v1742_v45 = vld [vmem:[%s2056_s4] ss:$0 sm:$0xff] }
  0x17   :  { %294 = vmatprep.subr.bf16.mxu1 %v1680_v26 }
  0x18   :  { %403 = vmatpush1.bf16.msra.mxu0 %v1676_v25 }
  0x19   :  { %404 = vmatprep.subr.bf16.mxu0 %v1680_v26 }
  0x1a   :  { %295 = vmatpush1.bf16.msra.mxu1 %v1684_v27 }
  0x1b   :  { %296 = vmatprep.subr.bf16.mxu1 %v1688_v28 }
  0x1c   :  { %405 = vmatpush1.bf16.msra.mxu0 %v1684_v27 }
  0x1d   :  { %406 = vmatprep.subr.bf16.mxu0 %v1688_v28 }
  0x1e   :  { %297 = vmatpush1.bf16.msra.mxu1 %v1693_v30 }
  0x1f   :  { %298 = vmatprep.subr.bf16.mxu1 %v1696_v31 }
  0x20   :  { %407 = vmatpush1.bf16.msra.mxu0 %v1693_v30 }
  0x21   :  { %408 = vmatprep.subr.bf16.mxu0 %v1696_v31 }
  0x22   :  { %299 = vmatpush1.bf16.msra.mxu1 %v1701_v32 }
  0x23   :  { %300 = vmatprep.subr.bf16.mxu1 %v1708_v33 }
  0x24   :  { %409 = vmatpush1.bf16.msra.mxu0 %v1701_v32 }
  0x25   :  { %410 = vmatprep.subr.bf16.mxu0 %v1708_v33 }
  0x26   :  { %301 = vmatpush1.bf16.msra.mxu1 %v1710_v34 }
  0x27   :  { %510 = vmatprep.subr.bf16.mxu1 %v1667_v22 }
  0x28   :  { %411 = vmatpush1.bf16.msra.mxu0 %v1710_v34 }
  0x29   :  { %620 = vmatprep.subr.bf16.mxu0 %v1667_v22 }
  0xd3   :  { %v1648_v4 = vpop.f32.mrf.mxu0 }
  0xd5   :  { %v129_v6 = vpop.f32.mrf.mxu0 }
  0xd6   :  { %v130_v7 = vadd.f32 %v1653_v5, %v129_v6 }
  0xd7   :  { %v1737_v43 = vpop.f32.mrf.mxu0 }
  0xd8   :  { %v1281_v8 = vmul.f32 -1.442695, %v130_v7 }
  0xd9   :  { %v132_v44 = vpop.f32.mrf.mxu0 }
  0xda   :  { %1394 = vpow2.f32 %v1281_v8  ;;  %v133_v47 = vadd.f32 %v1653_v5, %v132_v44 }
  0xdb   :  { %1396 = vtanh.f32 %v130_v7 }
  0xe7   :  { %v1395_v9 = vpop.eup %1394 }
  0xe8   :  { %v183_v10 = vadd.f32 1.0, %v1395_v9  ;;  %v1397_v14 = vpop.eup %1396 }
  0xea   :  { %1398 = vrcp.f32 %v183_v10 }
  0xf7   :  { %v1399_v15 = vpop.eup %1398 }
  0xf8   :  { %v192_v16 = vsel %vm1656_vm4, %v1397_v14, %v1399_v15  ;;  %v1390_v14 = vld [vmem:[%s2052_s0 + $0x10] sm:$0xff]   ;;  %v1391_v15 = vld [vmem:[%s2052_s0 + $0x18] sm:$0xff]  }
  0xf9   :  { %195 = vrot.lane.b32.xlu0 %v192_v16, %s1586_s1  ;;  %v193_v19 = vmul.f32 0.0, %v192_v16  ;;  %1341 = vmatprep.mubr.msk.bf16.mxu0 %vm78_vm1, %v1390_v14 }
  0xfa   :  { %1342 = vmatmul.mubr.msk.bf16.gmra.mxu0 %vm78_vm1, %v1391_v15 }
  0xfb   :  { %428 = vmatprep.mubr.bf16.mxu0 %v1588_v35 }
 0x16b   :  { %v196_v17 = vpop.permute.xlu0 %195 }
 0x16c   :  { %v198_v18 = vmul.f32 %v196_v17, %v192_v16 }
 0x16e   :  { %200 = vrot.lane.b32.xlu0 %v198_v18, %s1587_s15 }
 0x1e0   :  { %v201_v20 = vpop.permute.xlu0 %200 }
 0x1e1   :  { %v1664_v21 = vadd.f32 %v201_v20, %v193_v19 }
 0x1e3   :  { %1400 = vtanh.f32 %v1664_v21 }
 0x1f0   :  { %v1401_v29 = vpop.eup %1400 }
 0x1f1   :  { %206 = vrot.lane.b32.xlu1 %v1401_v29, %s1586_s1 }
 0x263   :  { %v207_v36 = vpop.permute.xlu1 %206 }
 0x264   :  { %v209_v37 = vmul.f32 %v207_v36, %v192_v16 }
 0x266   :  { %214 = vrot.lane.b32.xlu0 %v209_v37, %s1589_s16  ;;  %211 = vrot.lane.b32.xlu1 %v209_v37, %s1587_s15 }
 0x2d8   :  { %v215_v38 = vpop.permute.xlu0 %214  ;;  %v212_v39 = vpop.permute.xlu1 %211 }
 0x2d9   :  { %v218_v40 = vsel %vm217_vm5, %v212_v39, 0.0 }
 0x2da   :  { %v220_v41 = vsel %vm219_vm6, %v218_v40, %v215_v38 }
 0x2db   :  { %v221_v42 = vpack.c.bf16 %v220_v41, %v220_v41  ;;  %v1794_v41 = vpop.f32.mrf.mxu0 }
 0x2dd   :  { %1294 = vmatmul.mubr.msk.bf16.vlgmr.msra.gmra.mxu1 %vm282_vm7, %v221_v42  ;;  %v1796_v42 = vpop.f32.mrf.mxu0 }
 0x2de   :  { %511 = vmatpush1.bf16.msra.mxu1 %v1669_v23  ;;  %538 = vmatprep.mubr.bf16.mxu1 %v1588_v35 }
 0x2df   :  { %512 = vmatprep.subr.bf16.mxu1 %v1671_v24  ;;  %v1798_v44 = vpop.f32.mrf.mxu0 }
 0x2e2   :  { %513 = vmatpush1.bf16.msra.mxu1 %v1676_v25 }
 0x2e3   :  { %514 = vmatprep.subr.bf16.mxu1 %v1680_v26 }
 0x2e6   :  { %515 = vmatpush1.bf16.msra.mxu1 %v1684_v27 }
 0x2e7   :  { %516 = vmatprep.subr.bf16.mxu1 %v1688_v28 }
 0x2ea   :  { %517 = vmatpush1.bf16.msra.mxu1 %v1693_v30 }
 0x2eb   :  { %518 = vmatprep.subr.bf16.mxu1 %v1696_v31 }
 0x2ee   :  { %519 = vmatpush1.bf16.msra.mxu1 %v1701_v32 }
 0x2ef   :  { %520 = vmatprep.subr.bf16.mxu1 %v1708_v33 }
 0x2f2   :  { %521 = vmatpush1.bf16.msra.mxu1 %v1710_v34 }
 0x2f3   :  { %730 = vmatprep.subr.bf16.mxu1 %v1667_v22 }
 0x39d   :  { %v320_v46 = vpop.f32.mrf.mxu1 }
 0x39e   :  { %v327_v48 = vadd.f32 %v1742_v45, %v320_v46  ;;  %v1800_v46 = vpop.f32.mrf.mxu0 }
 0x39f   :  { %v322_v49 = vpop.f32.mrf.mxu1 }
 0x3a0   :  { %v1295_v50 = vmul.f32 -1.442695, %v327_v48  ;;  %v353_v51 = vadd.f32 %v322_v49, %v133_v47 }
 0x3a1   :  { %v324_v52 = vpop.f32.mrf.mxu1 }
 0x3a2   :  { %1402 = vpow2.f32 %v1295_v50  ;;  %v1296_v53 = vmul.f32 -1.442695, %v353_v51 }
 0x3a3   :  { %v325_v54 = vpop.f32.mrf.mxu1 }
 0x3a4   :  { %1404 = vpow2.f32 %v1296_v53 }
 0x3a5   :  { %1406 = vtanh.f32 %v327_v48  ;;  %v138_v48 = vadd.f32 %v1648_v4, %v1653_v5 }
 0x3af   :  { %v1403_v55 = vpop.eup %1402 }
 0x3b0   :  { %v331_v56 = vadd.f32 1.0, %v1403_v55 }
 0x3b1   :  { %v1405_v57 = vpop.eup %1404 }
 0x3b2   :  { %1408 = vrcp.f32 %v331_v56  ;;  %v357_v58 = vadd.f32 1.0, %v1405_v57  ;;  %v1407_v59 = vpop.eup %1406 }
 0x3b3   :  { %1410 = vtanh.f32 %v353_v51 }
 0x3b4   :  { %1412 = vrcp.f32 %v357_v58 }
 0x3bf   :  { %v1409_v60 = vpop.eup %1408 }
 0x3c0   :  { %v1411_v61 = vpop.eup %1410  ;;  %v335_v62 = vsel %vm1656_vm4, %v1407_v59, %v1409_v60 }
 0x3c1   :  { %v1413_v63 = vpop.eup %1412  ;;  %338 = vrot.lane.b32.xlu1 %v335_v62, %s1586_s1  ;;  %v336_v7 = vmul.f32 0.0, %v335_v62 }
 0x3c2   :  { %v361_v0 = vsel %vm1656_vm4, %v1411_v61, %v1413_v63 }
 0x3c3   :  { %364 = vrot.lane.b32.xlu0 %v361_v0, %s1586_s1  ;;  %v362_v10 = vmul.f32 %v361_v0, %v1664_v21 }
 0x433   :  { %v339_v1 = vpop.permute.xlu1 %338 }
 0x434   :  { %v341_v2 = vmul.f32 %v339_v1, %v335_v62 }
 0x435   :  { %v365_v3 = vpop.permute.xlu0 %364 }
 0x436   :  { %v367_v6 = vmul.f32 %v365_v3, %v361_v0  ;;  %343 = vrot.lane.b32.xlu1 %v341_v2, %s1587_s15 }
 0x438   :  { %369 = vrot.lane.b32.xlu0 %v367_v6, %s1587_s15 }
 0x4a8   :  { %v344_v8 = vpop.permute.xlu1 %343 }
 0x4a9   :  { %v1754_v9 = vadd.f32 %v344_v8, %v336_v7 }
 0x4aa   :  { %v370_v11 = vpop.permute.xlu0 %369 }
 0x4ab   :  { %1414 = vtanh.f32 %v1754_v9  ;;  %v1758_v12 = vadd.f32 %v370_v11, %v362_v10 }
 0x4ad   :  { %1416 = vtanh.f32 %v1758_v12 }
 0x4b8   :  { %v1415_v16 = vpop.eup %1414 }
 0x4b9   :  { %349 = vrot.lane.b32.xlu1 %v1415_v16, %s1586_s1 }
 0x4ba   :  { %v1417_v17 = vpop.eup %1416 }
 0x4bb   :  { %375 = vrot.lane.b32.xlu0 %v1417_v17, %s1586_s1 }
 0x52b   :  { %v350_v18 = vpop.permute.xlu1 %349 }
 0x52c   :  { %v1772_v19 = vmul.f32 %v350_v18, %v335_v62 }
 0x52d   :  { %v376_v20 = vpop.permute.xlu0 %375 }
 0x52e   :  { %v378_v21 = vmul.f32 %v376_v20, %v361_v0  ;;  %384 = vrot.lane.b32.xlu0 %v1772_v19, %s1586_s1 }
 0x530   :  { %380 = vrot.lane.b32.xlu1 %v378_v21, %s1587_s15 }
 0x534   :  { %387 = vrot.lane.b32.xlu1 %v378_v21, %s1589_s16 }
 0x5a0   :  { %v385_v36 = vpop.permute.xlu0 %384 }
 0x5a2   :  { %v381_v29 = vpop.permute.xlu1 %380 }
 0x5a3   :  { %v390_v37 = vsel %vm217_vm5, %v381_v29, %v385_v36 }
 0x5a6   :  { %v388_v38 = vpop.permute.xlu1 %387 }
 0x5a7   :  { %v391_v39 = vsel %vm219_vm6, %v390_v37, %v388_v38 }
 0x5a8   :  { %v392_v40 = vpack.c.bf16 %v391_v39, %v391_v39 }
 0x5aa   :  { %1297 = vmatmul.mubr.msk.bf16.vlgmr.msra.gmra.mxu0 %vm282_vm7, %v392_v40 }
 0x5ab   :  { %621 = vmatpush1.bf16.msra.mxu0 %v1669_v23  ;;  %648 = vmatprep.mubr.bf16.mxu0 %v1588_v35 }
 0x5ac   :  { %622 = vmatprep.subr.bf16.mxu0 %v1671_v24 }
 0x5af   :  { %623 = vmatpush1.bf16.msra.mxu0 %v1676_v25 }
 0x5b0   :  { %624 = vmatprep.subr.bf16.mxu0 %v1680_v26 }
 0x5b3   :  { %625 = vmatpush1.bf16.msra.mxu0 %v1684_v27 }
 0x5b4   :  { %626 = vmatprep.subr.bf16.mxu0 %v1688_v28 }
 0x5b7   :  { %627 = vmatpush1.bf16.msra.mxu0 %v1693_v30 }
 0x5b8   :  { %628 = vmatprep.subr.bf16.mxu0 %v1696_v31 }
 0x5bb   :  { %629 = vmatpush1.bf16.msra.mxu0 %v1701_v32 }
 0x5bc   :  { %630 = vmatprep.subr.bf16.mxu0 %v1708_v33 }
 0x5bf   :  { %631 = vmatpush1.bf16.msra.mxu0 %v1710_v34 }
 0x5c0   :  { %840 = vmatprep.subr.bf16.mxu0 %v1667_v22 }
 0x66a   :  { %v430_v47 = vpop.f32.mrf.mxu0 }
 0x66b   :  { %v437_v49 = vadd.f32 %v1742_v45, %v430_v47  ;;  %v141_v47 = vadd.f32 %v1737_v43, %v1653_v5 }
 0x66c   :  { %v432_v50 = vpop.f32.mrf.mxu0 }
 0x66d   :  { %v1298_v51 = vmul.f32 -1.442695, %v437_v49  ;;  %v463_v52 = vadd.f32 %v432_v50, %v138_v48 }
 0x66e   :  { %v434_v53 = vpop.f32.mrf.mxu0 }
 0x66f   :  { %1418 = vpow2.f32 %v1298_v51  ;;  %v1299_v54 = vmul.f32 -1.442695, %v463_v52 }
 0x670   :  { %v435_v55 = vpop.f32.mrf.mxu0 }
 0x671   :  { %1420 = vpow2.f32 %v1299_v54 }
 0x672   :  { %1422 = vtanh.f32 %v437_v49 }
 0x67c   :  { %v1419_v56 = vpop.eup %1418 }
 0x67d   :  { %v441_v57 = vadd.f32 1.0, %v1419_v56 }
 0x67e   :  { %v1421_v58 = vpop.eup %1420 }
 0x67f   :  { %1424 = vrcp.f32 %v441_v57  ;;  %v467_v59 = vadd.f32 1.0, %v1421_v58  ;;  %v1423_v60 = vpop.eup %1422 }
 0x680   :  { %1426 = vtanh.f32 %v463_v52 }
 0x681   :  { %1428 = vrcp.f32 %v467_v59 }
 0x68c   :  { %v1425_v4 = vpop.eup %1424 }
 0x68d   :  { %v1427_v61 = vpop.eup %1426  ;;  %v445_v62 = vsel %vm1656_vm4, %v1423_v60, %v1425_v4 }
 0x68e   :  { %v1429_v63 = vpop.eup %1428  ;;  %448 = vrot.lane.b32.xlu0 %v445_v62, %s1586_s1  ;;  %v446_v7 = vmul.f32 %v445_v62, %v1754_v9 }
 0x68f   :  { %v471_v0 = vsel %vm1656_vm4, %v1427_v61, %v1429_v63 }
 0x690   :  { %474 = vrot.lane.b32.xlu1 %v471_v0, %s1586_s1  ;;  %v472_v11 = vmul.f32 %v471_v0, %v1758_v12 }
 0x700   :  { %v449_v1 = vpop.permute.xlu0 %448 }
 0x701   :  { %v451_v2 = vmul.f32 %v449_v1, %v445_v62 }
 0x702   :  { %v475_v3 = vpop.permute.xlu1 %474 }
 0x703   :  { %v477_v6 = vmul.f32 %v475_v3, %v471_v0  ;;  %453 = vrot.lane.b32.xlu0 %v451_v2, %s1587_s15 }
 0x705   :  { %479 = vrot.lane.b32.xlu1 %v477_v6, %s1587_s15 }
 0x775   :  { %v454_v8 = vpop.permute.xlu0 %453 }
 0x776   :  { %v1814_v10 = vadd.f32 %v454_v8, %v446_v7 }
 0x777   :  { %v480_v14 = vpop.permute.xlu1 %479 }
 0x778   :  { %1430 = vtanh.f32 %v1814_v10  ;;  %v1818_v15 = vadd.f32 %v480_v14, %v472_v11 }
 0x77a   :  { %1432 = vtanh.f32 %v1818_v15 }
 0x785   :  { %v1431_v16 = vpop.eup %1430 }
 0x786   :  { %459 = vrot.lane.b32.xlu0 %v1431_v16, %s1586_s1 }
 0x787   :  { %v1433_v17 = vpop.eup %1432 }
 0x788   :  { %485 = vrot.lane.b32.xlu1 %v1433_v17, %s1586_s1 }
 0x7f8   :  { %v460_v18 = vpop.permute.xlu0 %459 }
 0x7f9   :  { %v1823_v9 = vmul.f32 %v460_v18, %v445_v62 }
 0x7fa   :  { %v486_v20 = vpop.permute.xlu1 %485 }
 0x7fb   :  { %v488_v21 = vmul.f32 %v486_v20, %v471_v0  ;;  %494 = vrot.lane.b32.xlu1 %v1823_v9, %s1586_s1 }
 0x7fd   :  { %490 = vrot.lane.b32.xlu0 %v488_v21, %s1587_s15 }
 0x801   :  { %497 = vrot.lane.b32.xlu0 %v488_v21, %s1589_s16 }
 0x86d   :  { %v495_v29 = vpop.permute.xlu1 %494 }
 0x86f   :  { %v491_v12 = vpop.permute.xlu0 %490 }
 0x870   :  { %v500_v36 = vsel %vm217_vm5, %v491_v12, %v495_v29 }
 0x873   :  { %v498_v37 = vpop.permute.xlu0 %497 }
 0x874   :  { %v501_v38 = vsel %vm219_vm6, %v500_v36, %v498_v37 }
 0x875   :  { %v502_v39 = vpack.c.bf16 %v501_v38, %v501_v38 }
 0x877   :  { %1300 = vmatmul.mubr.msk.bf16.vlgmr.msra.gmra.mxu1 %vm282_vm7, %v502_v39 }
 0x878   :  { %731 = vmatpush1.bf16.msra.mxu1 %v1669_v23  ;;  %758 = vmatprep.mubr.bf16.mxu1 %v1588_v35 }
 0x879   :  { %732 = vmatprep.subr.bf16.mxu1 %v1671_v24 }
 0x87c   :  { %733 = vmatpush1.bf16.msra.mxu1 %v1676_v25 }
 0x87d   :  { %734 = vmatprep.subr.bf16.mxu1 %v1680_v26 }
 0x880   :  { %735 = vmatpush1.bf16.msra.mxu1 %v1684_v27 }
 0x881   :  { %736 = vmatprep.subr.bf16.mxu1 %v1688_v28 }
 0x884   :  { %737 = vmatpush1.bf16.msra.mxu1 %v1693_v30 }
 0x885   :  { %738 = vmatprep.subr.bf16.mxu1 %v1696_v31 }
 0x888   :  { %739 = vmatpush1.bf16.msra.mxu1 %v1701_v32 }
 0x889   :  { %740 = vmatprep.subr.bf16.mxu1 %v1708_v33 }
 0x88c   :  { %741 = vmatpush1.bf16.msra.mxu1 %v1710_v34 }
 0x88d   :  { %950 = vmatprep.subr.bf16.mxu1 %v1667_v22 }
 0x937   :  { %v540_v40 = vpop.f32.mrf.mxu1 }
 0x938   :  { %v547_v48 = vadd.f32 %v1742_v45, %v540_v40  ;;  %v146_v40 = vadd.f32 %v1653_v5, %v1796_v42 }
 0x939   :  { %v542_v49 = vpop.f32.mrf.mxu1 }
 0x93a   :  { %v1301_v50 = vmul.f32 -1.442695, %v547_v48  ;;  %v573_v51 = vadd.f32 %v542_v49, %v141_v47 }
 0x93b   :  { %v544_v52 = vpop.f32.mrf.mxu1 }
 0x93c   :  { %1434 = vpow2.f32 %v1301_v50  ;;  %v1302_v53 = vmul.f32 -1.442695, %v573_v51 }
 0x93d   :  { %v545_v54 = vpop.f32.mrf.mxu1 }
 0x93e   :  { %1436 = vpow2.f32 %v1302_v53 }
 0x93f   :  { %1438 = vtanh.f32 %v547_v48 }
 0x949   :  { %v1435_v55 = vpop.eup %1434 }
 0x94a   :  { %v551_v56 = vadd.f32 1.0, %v1435_v55 }
 0x94b   :  { %v1437_v57 = vpop.eup %1436 }
 0x94c   :  { %1440 = vrcp.f32 %v551_v56  ;;  %v577_v58 = vadd.f32 1.0, %v1437_v57  ;;  %v1439_v59 = vpop.eup %1438 }
 0x94d   :  { %1442 = vtanh.f32 %v573_v51 }
 0x94e   :  { %1444 = vrcp.f32 %v577_v58 }
 0x959   :  { %v1441_v43 = vpop.eup %1440 }
 0x95a   :  { %v1443_v60 = vpop.eup %1442  ;;  %v555_v4 = vsel %vm1656_vm4, %v1439_v59, %v1441_v43 }
 0x95b   :  { %v1445_v61 = vpop.eup %1444  ;;  %558 = vrot.lane.b32.xlu1 %v555_v4, %s1586_s1  ;;  %v556_v3 = vmul.f32 %v555_v4, %v1814_v10 }
 0x95c   :  { %v581_v62 = vsel %vm1656_vm4, %v1443_v60, %v1445_v61 }
 0x95d   :  { %584 = vrot.lane.b32.xlu0 %v581_v62, %s1586_s1  ;;  %v582_v8 = vmul.f32 %v581_v62, %v1818_v15 }
 0x9cd   :  { %v559_v63 = vpop.permute.xlu1 %558 }
 0x9ce   :  { %v561_v0 = vmul.f32 %v559_v63, %v555_v4 }
 0x9cf   :  { %v585_v1 = vpop.permute.xlu0 %584 }
 0x9d0   :  { %v587_v2 = vmul.f32 %v585_v1, %v581_v62  ;;  %563 = vrot.lane.b32.xlu1 %v561_v0, %s1587_s15 }
 0x9d2   :  { %589 = vrot.lane.b32.xlu0 %v587_v2, %s1587_s15 }
 0xa42   :  { %v564_v6 = vpop.permute.xlu1 %563 }
 0xa43   :  { %v1857_v7 = vadd.f32 %v564_v6, %v556_v3 }
 0xa44   :  { %v590_v11 = vpop.permute.xlu0 %589 }
 0xa45   :  { %1446 = vtanh.f32 %v1857_v7  ;;  %v1861_v14 = vadd.f32 %v590_v11, %v582_v8 }
 0xa47   :  { %1448 = vtanh.f32 %v1861_v14 }
 0xa52   :  { %v1447_v16 = vpop.eup %1446 }
 0xa53   :  { %569 = vrot.lane.b32.xlu1 %v1447_v16, %s1586_s1 }
 0xa54   :  { %v1449_v17 = vpop.eup %1448 }
 0xa55   :  { %595 = vrot.lane.b32.xlu0 %v1449_v17, %s1586_s1 }
 0xac5   :  { %v570_v18 = vpop.permute.xlu1 %569 }
 0xac6   :  { %v1866_v10 = vmul.f32 %v570_v18, %v555_v4 }
 0xac7   :  { %v596_v20 = vpop.permute.xlu0 %595 }
 0xac8   :  { %v598_v21 = vmul.f32 %v596_v20, %v581_v62  ;;  %604 = vrot.lane.b32.xlu0 %v1866_v10, %s1586_s1 }
 0xaca   :  { %600 = vrot.lane.b32.xlu1 %v598_v21, %s1587_s15 }
 0xace   :  { %607 = vrot.lane.b32.xlu1 %v598_v21, %s1589_s16 }
 0xb3a   :  { %v605_v12 = vpop.permute.xlu0 %604 }
 0xb3c   :  { %v601_v15 = vpop.permute.xlu1 %600 }
 0xb3d   :  { %v610_v29 = vsel %vm217_vm5, %v601_v15, %v605_v12 }
 0xb40   :  { %v608_v36 = vpop.permute.xlu1 %607 }
 0xb41   :  { %v611_v37 = vsel %vm219_vm6, %v610_v29, %v608_v36 }
 0xb42   :  { %v612_v38 = vpack.c.bf16 %v611_v37, %v611_v37 }
 0xb44   :  { %1303 = vmatmul.mubr.msk.bf16.vlgmr.msra.gmra.mxu0 %vm282_vm7, %v612_v38  ;;  %v149_v38 = vadd.f32 %v1653_v5, %v1800_v46 }
 0xb45   :  { %841 = vmatpush1.bf16.msra.mxu0 %v1669_v23  ;;  %868 = vmatprep.mubr.bf16.mxu0 %v1588_v35 }
 0xb46   :  { %842 = vmatprep.subr.bf16.mxu0 %v1671_v24 }
 0xb49   :  { %843 = vmatpush1.bf16.msra.mxu0 %v1676_v25 }
 0xb4a   :  { %844 = vmatprep.subr.bf16.mxu0 %v1680_v26 }
 0xb4d   :  { %845 = vmatpush1.bf16.msra.mxu0 %v1684_v27 }
 0xb4e   :  { %846 = vmatprep.subr.bf16.mxu0 %v1688_v28 }
 0xb51   :  { %847 = vmatpush1.bf16.msra.mxu0 %v1693_v30 }
 0xb52   :  { %848 = vmatprep.subr.bf16.mxu0 %v1696_v31 }
 0xb55   :  { %849 = vmatpush1.bf16.msra.mxu0 %v1701_v32 }
 0xb56   :  { %850 = vmatprep.subr.bf16.mxu0 %v1708_v33 }
 0xb59   :  { %851 = vmatpush1.bf16.msra.mxu0 %v1710_v34 }
 0xb5a   :  { %1060 = vmatprep.subr.bf16.mxu0 %v1667_v22 }
 0xc04   :  { %v650_v39 = vpop.f32.mrf.mxu0 }
 0xc05   :  { %v657_v47 = vadd.f32 %v1742_v45, %v650_v39 }
 0xc06   :  { %v652_v48 = vpop.f32.mrf.mxu0 }
 0xc07   :  { %v1304_v49 = vmul.f32 -1.442695, %v657_v47  ;;  %v683_v50 = vadd.f32 %v652_v48, %v146_v40 }
 0xc08   :  { %v654_v51 = vpop.f32.mrf.mxu0 }
 0xc09   :  { %1450 = vpow2.f32 %v1304_v49  ;;  %v1305_v52 = vmul.f32 -1.442695, %v683_v50 }
 0xc0a   :  { %v655_v53 = vpop.f32.mrf.mxu0 }
 0xc0b   :  { %1452 = vpow2.f32 %v1305_v52 }
 0xc0c   :  { %1454 = vtanh.f32 %v657_v47 }
 0xc16   :  { %v1451_v54 = vpop.eup %1450 }
 0xc17   :  { %v661_v55 = vadd.f32 1.0, %v1451_v54 }
 0xc18   :  { %v1453_v56 = vpop.eup %1452 }
 0xc19   :  { %1456 = vrcp.f32 %v661_v55  ;;  %v687_v22 = vadd.f32 1.0, %v1453_v56  ;;  %v1455_v57 = vpop.eup %1454 }
 0xc1a   :  { %1458 = vtanh.f32 %v683_v50 }
 0xc1b   :  { %1460 = vrcp.f32 %v687_v22 }
 0xc26   :  { %v1457_v42 = vpop.eup %1456 }
 0xc27   :  { %v1459_v58 = vpop.eup %1458  ;;  %v665_v59 = vsel %vm1656_vm4, %v1455_v57, %v1457_v42 }
 0xc28   :  { %v1461_v43 = vpop.eup %1460  ;;  %668 = vrot.lane.b32.xlu0 %v665_v59, %s1586_s1  ;;  %v666_v0 = vmul.f32 %v665_v59, %v1857_v7 }
 0xc29   :  { %v691_v60 = vsel %vm1656_vm4, %v1459_v58, %v1461_v43 }
 0xc2a   :  { %694 = vrot.lane.b32.xlu1 %v691_v60, %s1586_s1  ;;  %v692_v3 = vmul.f32 %v691_v60, %v1861_v14 }
 0xc9a   :  { %v669_v4 = vpop.permute.xlu0 %668 }
 0xc9b   :  { %v671_v61 = vmul.f32 %v669_v4, %v665_v59 }
 0xc9c   :  { %v695_v62 = vpop.permute.xlu1 %694 }
 0xc9d   :  { %v697_v63 = vmul.f32 %v695_v62, %v691_v60  ;;  %673 = vrot.lane.b32.xlu0 %v671_v61, %s1587_s15 }
 0xc9f   :  { %699 = vrot.lane.b32.xlu1 %v697_v63, %s1587_s15 }
 0xd0f   :  { %v674_v1 = vpop.permute.xlu0 %673 }
 0xd10   :  { %v1900_v2 = vadd.f32 %v674_v1, %v666_v0 }
 0xd11   :  { %v700_v6 = vpop.permute.xlu1 %699 }
 0xd12   :  { %1462 = vtanh.f32 %v1900_v2  ;;  %v1904_v8 = vadd.f32 %v700_v6, %v692_v3 }
 0xd14   :  { %1464 = vtanh.f32 %v1904_v8 }
 0xd1f   :  { %v1463_v11 = vpop.eup %1462 }
 0xd20   :  { %679 = vrot.lane.b32.xlu0 %v1463_v11, %s1586_s1 }
 0xd21   :  { %v1465_v16 = vpop.eup %1464 }
 0xd22   :  { %705 = vrot.lane.b32.xlu1 %v1465_v16, %s1586_s1 }
 0xd92   :  { %v680_v17 = vpop.permute.xlu0 %679 }
 0xd93   :  { %v1909_v7 = vmul.f32 %v680_v17, %v665_v59 }
 0xd94   :  { %v706_v18 = vpop.permute.xlu1 %705 }
 0xd95   :  { %v708_v20 = vmul.f32 %v706_v18, %v691_v60  ;;  %714 = vrot.lane.b32.xlu1 %v1909_v7, %s1586_s1 }
 0xd97   :  { %710 = vrot.lane.b32.xlu0 %v708_v20, %s1587_s15 }
 0xd9b   :  { %717 = vrot.lane.b32.xlu0 %v708_v20, %s1589_s16 }
 0xe07   :  { %v715_v21 = vpop.permute.xlu1 %714 }
 0xe09   :  { %v711_v14 = vpop.permute.xlu0 %710 }
 0xe0a   :  { %v720_v15 = vsel %vm217_vm5, %v711_v14, %v715_v21 }
 0xe0d   :  { %v718_v12 = vpop.permute.xlu0 %717 }
 0xe0e   :  { %v721_v29 = vsel %vm219_vm6, %v720_v15, %v718_v12 }
 0xe0f   :  { %v722_v36 = vpack.c.bf16 %v721_v29, %v721_v29 }
 0xe11   :  { %1306 = vmatmul.mubr.msk.bf16.vlgmr.msra.gmra.mxu1 %vm282_vm7, %v722_v36 }
 0xe12   :  { %951 = vmatpush1.bf16.msra.mxu1 %v1669_v23  ;;  %978 = vmatprep.mubr.bf16.mxu1 %v1588_v35 }
 0xe13   :  { %952 = vmatprep.subr.bf16.mxu1 %v1671_v24 }
 0xe16   :  { %953 = vmatpush1.bf16.msra.mxu1 %v1676_v25 }
 0xe17   :  { %954 = vmatprep.subr.bf16.mxu1 %v1680_v26 }
 0xe1a   :  { %955 = vmatpush1.bf16.msra.mxu1 %v1684_v27 }
 0xe1b   :  { %956 = vmatprep.subr.bf16.mxu1 %v1688_v28 }
 0xe1e   :  { %957 = vmatpush1.bf16.msra.mxu1 %v1693_v30 }
 0xe1f   :  { %958 = vmatprep.subr.bf16.mxu1 %v1696_v31 }
 0xe22   :  { %959 = vmatpush1.bf16.msra.mxu1 %v1701_v32 }
 0xe23   :  { %960 = vmatprep.subr.bf16.mxu1 %v1708_v33 }
 0xe26   :  { %961 = vmatpush1.bf16.msra.mxu1 %v1710_v34 }
 0xed1   :  { %v760_v37 = vpop.f32.mrf.mxu1 }
 0xed2   :  { %v767_v39 = vadd.f32 %v1742_v45, %v760_v37 }
 0xed3   :  { %v762_v40 = vpop.f32.mrf.mxu1 }
 0xed4   :  { %v1307_v47 = vmul.f32 -1.442695, %v767_v39  ;;  %v793_v48 = vadd.f32 %v762_v40, %v149_v38 }
 0xed5   :  { %v764_v49 = vpop.f32.mrf.mxu1 }
 0xed6   :  { %1466 = vpow2.f32 %v1307_v47  ;;  %v1308_v50 = vmul.f32 -1.442695, %v793_v48 }
 0xed7   :  { %v765_v51 = vpop.f32.mrf.mxu1 }
 0xed8   :  { %1468 = vpow2.f32 %v1308_v50 }
 0xed9   :  { %1470 = vtanh.f32 %v767_v39 }
 0xee3   :  { %v1467_v52 = vpop.eup %1466 }
 0xee4   :  { %v771_v53 = vadd.f32 1.0, %v1467_v52 }
 0xee5   :  { %v1469_v54 = vpop.eup %1468 }
 0xee6   :  { %1472 = vrcp.f32 %v771_v53  ;;  %v797_v55 = vadd.f32 1.0, %v1469_v54  ;;  %v1471_v56 = vpop.eup %1470 }
 0xee7   :  { %1474 = vtanh.f32 %v793_v48 }
 0xee8   :  { %1476 = vrcp.f32 %v797_v55 }
 0xef3   :  { %v1473_v46 = vpop.eup %1472 }
 0xef4   :  { %v1475_v22 = vpop.eup %1474  ;;  %v775_v57 = vsel %vm1656_vm4, %v1471_v56, %v1473_v46 }
 0xef5   :  { %v1477_v42 = vpop.eup %1476  ;;  %778 = vrot.lane.b32.xlu1 %v775_v57, %s1586_s1  ;;  %v776_v61 = vmul.f32 %v775_v57, %v1900_v2 }
 0xef6   :  { %v801_v58 = vsel %vm1656_vm4, %v1475_v22, %v1477_v42 }
 0xef7   :  { %804 = vrot.lane.b32.xlu0 %v801_v58, %s1586_s1  ;;  %v802_v0 = vmul.f32 %v801_v58, %v1904_v8 }
 0xf67   :  { %v779_v59 = vpop.permute.xlu1 %778 }
 0xf68   :  { %v781_v43 = vmul.f32 %v779_v59, %v775_v57 }
 0xf69   :  { %v805_v60 = vpop.permute.xlu0 %804 }
 0xf6a   :  { %v807_v4 = vmul.f32 %v805_v60, %v801_v58  ;;  %783 = vrot.lane.b32.xlu1 %v781_v43, %s1587_s15 }
 0xf6c   :  { %809 = vrot.lane.b32.xlu0 %v807_v4, %s1587_s15 }
 0xfdc   :  { %v784_v62 = vpop.permute.xlu1 %783 }
 0xfdd   :  { %v1942_v63 = vadd.f32 %v784_v62, %v776_v61 }
 0xfde   :  { %v810_v1 = vpop.permute.xlu0 %809 }
 0xfdf   :  { %1478 = vtanh.f32 %v1942_v63  ;;  %v1946_v3 = vadd.f32 %v810_v1, %v802_v0  ;;  %v1538_v0 = vld [vmem:[%s2054_s2] ss:$0 sm:$0xff] }
 0xfe0   :  { %v157_v1 = vadd.f32 %v1538_v0, %v1798_v44 }
 0xfe1   :  { %1480 = vtanh.f32 %v1946_v3 }
 0xfec   :  { %v1479_v6 = vpop.eup %1478 }
 0xfed   :  { %789 = vrot.lane.b32.xlu1 %v1479_v6, %s1586_s1 }
 0xfee   :  { %v1481_v11 = vpop.eup %1480 }
 0xfef   :  { %815 = vrot.lane.b32.xlu0 %v1481_v11, %s1586_s1 }
0x105f   :  { %v790_v16 = vpop.permute.xlu1 %789 }
0x1060   :  { %v1951_v2 = vmul.f32 %v790_v16, %v775_v57 }
0x1061   :  { %v816_v17 = vpop.permute.xlu0 %815 }
0x1062   :  { %v818_v18 = vmul.f32 %v816_v17, %v801_v58  ;;  %824 = vrot.lane.b32.xlu0 %v1951_v2, %s1586_s1 }
0x1064   :  { %820 = vrot.lane.b32.xlu1 %v818_v18, %s1587_s15 }
0x1068   :  { %827 = vrot.lane.b32.xlu1 %v818_v18, %s1589_s16 }
0x10d4   :  { %v825_v20 = vpop.permute.xlu0 %824 }
0x10d6   :  { %v821_v8 = vpop.permute.xlu1 %820 }
0x10d7   :  { %v830_v14 = vsel %vm217_vm5, %v821_v8, %v825_v20 }
0x10da   :  { %v828_v21 = vpop.permute.xlu1 %827 }
0x10db   :  { %v831_v15 = vsel %vm219_vm6, %v830_v14, %v828_v21 }
0x10dc   :  { %v832_v12 = vpack.c.bf16 %v831_v15, %v831_v15 }
0x10de   :  { %1309 = vmatmul.mubr.msk.bf16.vlgmr.msra.gmra.mxu0 %vm282_vm7, %v832_v12 }
0x10df   :  { %1061 = vmatpush1.bf16.msra.mxu0 %v1669_v23  ;;  %1088 = vmatprep.mubr.bf16.mxu0 %v1588_v35 }
0x10e0   :  { %1062 = vmatprep.subr.bf16.mxu0 %v1671_v24  ;;  %v154_v24 = vadd.f32 %v1794_v41, %v1653_v5 }
0x10e3   :  { %1063 = vmatpush1.bf16.msra.mxu0 %v1676_v25 }
0x10e4   :  { %1064 = vmatprep.subr.bf16.mxu0 %v1680_v26 }
0x10e7   :  { %1065 = vmatpush1.bf16.msra.mxu0 %v1684_v27 }
0x10e8   :  { %1066 = vmatprep.subr.bf16.mxu0 %v1688_v28 }
0x10eb   :  { %1067 = vmatpush1.bf16.msra.mxu0 %v1693_v30 }
0x10ec   :  { %1068 = vmatprep.subr.bf16.mxu0 %v1696_v31 }
0x10ef   :  { %1069 = vmatpush1.bf16.msra.mxu0 %v1701_v32 }
0x10f0   :  { %1070 = vmatprep.subr.bf16.mxu0 %v1708_v33 }
0x10f3   :  { %1071 = vmatpush1.bf16.msra.mxu0 %v1710_v34 }
0x119e   :  { %v870_v23 = vpop.f32.mrf.mxu0 }
0x119f   :  { %v877_v25 = vadd.f32 %v1742_v45, %v870_v23 }
0x11a0   :  { %v872_v26 = vpop.f32.mrf.mxu0 }
0x11a1   :  { %v1310_v27 = vmul.f32 -1.442695, %v877_v25  ;;  %v903_v35 = vadd.f32 %v872_v26, %v154_v24 }
0x11a2   :  { %v874_v28 = vpop.f32.mrf.mxu0 }
0x11a3   :  { %1482 = vpow2.f32 %v1310_v27  ;;  %v1311_v30 = vmul.f32 -1.442695, %v903_v35 }
0x11a4   :  { %v875_v29 = vpop.f32.mrf.mxu0 }
0x11a5   :  { %1484 = vpow2.f32 %v1311_v30 }
0x11a6   :  { %1486 = vtanh.f32 %v877_v25 }
0x11b0   :  { %v1483_v31 = vpop.eup %1482 }
0x11b1   :  { %v881_v32 = vadd.f32 1.0, %v1483_v31 }
0x11b2   :  { %v1485_v36 = vpop.eup %1484 }
0x11b3   :  { %1488 = vrcp.f32 %v881_v32  ;;  %v907_v33 = vadd.f32 1.0, %v1485_v36  ;;  %v1487_v34 = vpop.eup %1486 }
0x11b4   :  { %1490 = vtanh.f32 %v903_v35 }
0x11b5   :  { %1492 = vrcp.f32 %v907_v33 }
0x11c0   :  { %v1489_v5 = vpop.eup %1488 }
0x11c1   :  { %v1491_v41 = vpop.eup %1490  ;;  %v885_v37 = vsel %vm1656_vm4, %v1487_v34, %v1489_v5 }
0x11c2   :  { %v1493_v38 = vpop.eup %1492  ;;  %888 = vrot.lane.b32.xlu0 %v885_v37, %s1586_s1  ;;  %v886_v50 = vmul.f32 %v885_v37, %v1942_v63 }
0x11c3   :  { %v911_v39 = vsel %vm1656_vm4, %v1491_v41, %v1493_v38 }
0x11c4   :  { %914 = vrot.lane.b32.xlu1 %v911_v39, %s1586_s1  ;;  %v912_v53 = vmul.f32 %v911_v39, %v1946_v3 }
0x1234   :  { %v889_v40 = vpop.permute.xlu0 %888 }
0x1235   :  { %v891_v47 = vmul.f32 %v889_v40, %v885_v37 }
0x1236   :  { %v915_v48 = vpop.permute.xlu1 %914 }
0x1237   :  { %v917_v49 = vmul.f32 %v915_v48, %v911_v39  ;;  %893 = vrot.lane.b32.xlu0 %v891_v47, %s1587_s15 }
0x1239   :  { %919 = vrot.lane.b32.xlu1 %v917_v49, %s1587_s15 }
0x12a9   :  { %v894_v51 = vpop.permute.xlu0 %893 }
0x12aa   :  { %v896_v52 = vadd.f32 %v894_v51, %v886_v50 }
0x12ab   :  { %v920_v54 = vpop.permute.xlu1 %919 }
0x12ac   :  { %1494 = vtanh.f32 %v896_v52  ;;  %v922_v55 = vadd.f32 %v920_v54, %v912_v53 }
0x12ae   :  { %1496 = vtanh.f32 %v922_v55 }
0x12b9   :  { %v1495_v56 = vpop.eup %1494 }
0x12ba   :  { %899 = vrot.lane.b32.xlu0 %v1495_v56, %s1586_s1 }
0x12bb   :  { %v1497_v46 = vpop.eup %1496 }
0x12bc   :  { %925 = vrot.lane.b32.xlu1 %v1497_v46, %s1586_s1 }
0x132c   :  { %v900_v22 = vpop.permute.xlu0 %899 }
0x132d   :  { %v1987_v57 = vmul.f32 %v900_v22, %v885_v37 }
0x132e   :  { %v926_v42 = vpop.permute.xlu1 %925 }
0x132f   :  { %v928_v58 = vmul.f32 %v926_v42, %v911_v39  ;;  %934 = vrot.lane.b32.xlu1 %v1987_v57, %s1586_s1 }
0x1331   :  { %930 = vrot.lane.b32.xlu0 %v928_v58, %s1587_s15 }
0x1335   :  { %937 = vrot.lane.b32.xlu0 %v928_v58, %s1589_s16 }
0x13a1   :  { %v935_v43 = vpop.permute.xlu1 %934 }
0x13a3   :  { %v931_v59 = vpop.permute.xlu0 %930 }
0x13a4   :  { %v940_v60 = vsel %vm217_vm5, %v931_v59, %v935_v43 }
0x13a7   :  { %v938_v4 = vpop.permute.xlu0 %937 }
0x13a8   :  { %v941_v61 = vsel %vm219_vm6, %v940_v60, %v938_v4  ;;  %v1393_v4 = vld [vmem:[%s2057_s5] sm:$0xff]  }
0x13a9   :  { %v942_v62 = vpack.c.bf16 %v941_v61, %v941_v61 }
0x13ab   :  { %1312 = vmatmul.mubr.msk.bf16.vlgmr.msra.gmra.mxu1 %vm282_vm7, %v942_v62  ;;  %v1122_v62 = vpack.c.bf16 %v1823_v9, %v1772_v19  ;;  %v1124_v19 = vpack.c.bf16 %v1987_v57, %v1951_v2 }
0x146b   :  { %v980_v63 = vpop.f32.mrf.mxu1 }
0x146c   :  { %v987_v3 = vadd.f32 %v1742_v45, %v980_v63  ;;  %v1123_v63 = vpack.c.bf16 %v1909_v7, %v1866_v10 }
0x146d   :  { %v982_v6 = vpop.f32.mrf.mxu1 }
0x146e   :  { %v1313_v11 = vmul.f32 -1.442695, %v987_v3  ;;  %v1013_v16 = vadd.f32 %v982_v6, %v157_v1 }
0x146f   :  { %v984_v17 = vpop.f32.mrf.mxu1 }
0x1470   :  { %1498 = vpow2.f32 %v1313_v11  ;;  %v1314_v18 = vmul.f32 -1.442695, %v1013_v16 }
0x1471   :  { %v985_v8 = vpop.f32.mrf.mxu1 }
0x1472   :  { %1500 = vpow2.f32 %v1314_v18  ;;  %v1317_v18 = vld [vmem:[%s2058_s6] ss:$0 sm:$0xff]  ;;  %s1590_s6 = smov [#allocation5]  }
0x1473   :  { %1502 = vtanh.f32 %v987_v3  ;;  %s1259_s29 = sshll.u32 %s1590_s6, 4  ;;  %s1260_s29 = int_to_ptr.vmem [resolvable:$true] %s1259_s29 }
0x1474   :  { %s1559_s30 = scalar_lea.vmem %s1260_s29, 1024  ;;  %p1564_p6 = scmp.lt.s32.totalorder %s1260_s29, %s1260_s29 }
0x1475   :  { %p1560_p5 = scmp.ne.s32.totalorder %s1260_s29, %s1559_s30  ;;  %p1565_p7 = scmp.lt.s32.totalorder %s1559_s30, %s1559_s30 }
0x1477   :  { %p1566_p8 = por %p1565_p7, %p1564_p6 }
0x1479   :  { %p1567_p9 = pnand %p1566_p8, %p1560_p5 }
0x147d   :  { %v1499_v20 = vpop.eup %1498 }
0x147e   :  { %v991_v14 = vadd.f32 1.0, %v1499_v20 }
0x147f   :  { %v1501_v21 = vpop.eup %1500 }
0x1480   :  { %1504 = vrcp.f32 %v991_v14  ;;  %v1017_v15 = vadd.f32 1.0, %v1501_v21  ;;  %v1503_v12 = vpop.eup %1502 }
0x1481   :  { %1506 = vtanh.f32 %v1013_v16 }
0x1482   :  { %1508 = vrcp.f32 %v1017_v15 }
0x148d   :  { %v1505_v44 = vpop.eup %1504 }
0x148e   :  { %v1507_v23 = vpop.eup %1506  ;;  %v995_v24 = vsel %vm1656_vm4, %v1503_v12, %v1505_v44 }
0x148f   :  { %v1509_v25 = vpop.eup %1508  ;;  %998 = vrot.lane.b32.xlu1 %v995_v24, %s1586_s1  ;;  %v996_v29 = vmul.f32 %v995_v24, %v896_v52 }
0x1490   :  { %v1021_v26 = vsel %vm1656_vm4, %v1507_v23, %v1509_v25 }
0x1491   :  { %1024 = vrot.lane.b32.xlu0 %v1021_v26, %s1586_s1  ;;  %v1022_v36 = vmul.f32 %v1021_v26, %v922_v55 }
0x1501   :  { %v999_v27 = vpop.permute.xlu1 %998 }
0x1502   :  { %v1001_v35 = vmul.f32 %v999_v27, %v995_v24 }
0x1503   :  { %v1025_v28 = vpop.permute.xlu0 %1024 }
0x1504   :  { %v1027_v30 = vmul.f32 %v1025_v28, %v1021_v26  ;;  %1003 = vrot.lane.b32.xlu1 %v1001_v35, %s1587_s15 }
0x1506   :  { %1029 = vrot.lane.b32.xlu0 %v1027_v30, %s1587_s15 }
0x1576   :  { %v1004_v31 = vpop.permute.xlu1 %1003 }
0x1577   :  { %v1006_v32 = vadd.f32 %v1004_v31, %v996_v29 }
0x1578   :  { %v1030_v33 = vpop.permute.xlu0 %1029 }
0x1579   :  { %1510 = vtanh.f32 %v1006_v32  ;;  %v1032_v34 = vadd.f32 %v1030_v33, %v1022_v36 }
0x157b   :  { %1512 = vtanh.f32 %v1032_v34 }
0x1586   :  { %v1511_v5 = vpop.eup %1510 }
0x1587   :  { %1009 = vrot.lane.b32.xlu1 %v1511_v5, %s1586_s1 }
0x1588   :  { %v1513_v41 = vpop.eup %1512 }
0x1589   :  { %1035 = vrot.lane.b32.xlu0 %v1513_v41, %s1586_s1 }
0x15f9   :  { %v1010_v37 = vpop.permute.xlu1 %1009 }
0x15fa   :  { %v1012_v38 = vmul.f32 %v1010_v37, %v995_v24 }
0x15fb   :  { %v1036_v39 = vpop.permute.xlu0 %1035 }
0x15fc   :  { %v1038_v40 = vmul.f32 %v1036_v39, %v1021_v26  ;;  %1044 = vrot.lane.b32.xlu0 %v1012_v38, %s1586_s1 }
0x15fe   :  { %1040 = vrot.lane.b32.xlu1 %v1038_v40, %s1587_s15 }
0x1602   :  { %1047 = vrot.lane.b32.xlu1 %v1038_v40, %s1589_s16 }
0x166e   :  { %v1045_v48 = vpop.permute.xlu0 %1044 }
0x1670   :  { %v1041_v47 = vpop.permute.xlu1 %1040 }
0x1671   :  { %v1050_v49 = vsel %vm217_vm5, %v1041_v47, %v1045_v48 }
0x1674   :  { %v1048_v50 = vpop.permute.xlu1 %1047 }
0x1675   :  { %v1051_v51 = vsel %vm219_vm6, %v1050_v49, %v1048_v50 }
0x1676   :  { %v1052_v52 = vpack.c.bf16 %v1051_v51, %v1051_v51 }
0x1678   :  { %1315 = vmatmul.mubr.msk.bf16.vlgmr.msra.gmra.mxu0 %vm282_vm7, %v1052_v52 }
0x1738   :  { %v1090_v53 = vpop.f32.mrf.mxu0 }
0x1739   :  { %v1096_v54 = vadd.f32 %v1742_v45, %v1090_v53  ;;  %v1392_v45 = vld [vmem:[%s2057_s5 + $0x8] sm:$0xff]  }
0x173a   :  { %v1092_v55 = vpop.f32.mrf.mxu0  ;;  %1345 = vmatprep.subr.bf16.mxu0 %v1392_v45  ;;  %1357 = vmatprep.subr.bf16.mxu1 %v1392_v45 }
0x173b   :  { %v1316_v56 = vmul.f32 -1.442695, %v1096_v54  ;;  %1346 = vmatpush3.bf16.msra.mxu0 %v1392_v45  ;;  %1359 = vmatpush3.bf16.msra.mxu1 %v1392_v45 }
0x173c   :  { %v1093_v46 = vpop.f32.mrf.mxu0  ;;  %1347 = vmatprep.subr.bf16.mxu0 %v1393_v4  ;;  %1358 = vmatprep.subr.bf16.mxu1 %v1393_v4 }
0x173d   :  { %1514 = vpow2.f32 %v1316_v56 }
0x173e   :  { %v1094_v22 = vpop.f32.mrf.mxu0  ;;  %1516 = vtanh.f32 %v1096_v54 }
0x173f   :  { %1348 = vmatpush3.bf16.msra.mxu0 %v1393_v4  ;;  %1360 = vmatpush3.bf16.msra.mxu1 %v1393_v4 }
0x174a   :  { %v1515_v42 = vpop.eup %1514 }
0x174b   :  { %v1100_v58 = vadd.f32 1.0, %v1515_v42  ;;  %v1517_v59 = vpop.eup %1516 }
0x174d   :  { %1518 = vrcp.f32 %v1100_v58 }
0x175a   :  { %v1519_v43 = vpop.eup %1518 }
0x175b   :  { %v1104_v60 = vsel %vm1656_vm4, %v1517_v59, %v1519_v43 }
0x175c   :  { %1107 = vrot.lane.b32.xlu0 %v1104_v60, %s1586_s1  ;;  %v1105_v0 = vmul.f32 %v1104_v60, %v1006_v32 }
0x17ce   :  { %v1108_v13 = vpop.permute.xlu0 %1107 }
0x17cf   :  { %v1110_v61 = vmul.f32 %v1108_v13, %v1104_v60 }
0x17d1   :  { %1112 = vrot.lane.b32.xlu1 %v1110_v61, %s1587_s15 }
0x17d5   :  { %1141 = vrot.lane.b32.xlu1 %v1122_v62, %s1587_s15 }
0x17d9   :  { %1143 = vrot.lane.b32.xlu1 %v1123_v63, %s1587_s15 }
0x1843   :  { %v1113_v1 = vpop.permute.xlu1 %1112 }
0x1844   :  { %v1115_v3 = vadd.f32 %v1113_v1, %v1105_v0 }
0x1846   :  { %1520 = vtanh.f32 %v1115_v3 }
0x1847   :  { %v1142_v6 = vpop.permute.xlu1 %1141 }
0x1848   :  { %1349 = vmatprep.mubr.msk.bf16.mxu0 %vm217_vm5, %v1142_v6 }
0x184b   :  { %v1144_v11 = vpop.permute.xlu1 %1143 }
0x184c   :  { %1350 = vmatmul.mubr.msk.bf16.vlgmr.msra.gmra.mxu0 %vm217_vm5, %v1144_v11 }
0x1853   :  { %v1521_v16 = vpop.eup %1520 }
0x1854   :  { %1118 = vrot.lane.b32.xlu0 %v1521_v16, %s1586_s1 }
0x1858   :  { %1145 = vrot.lane.b32.xlu0 %v1124_v19, %s1587_s15 }
0x18c6   :  { %v1119_v9 = vpop.permute.xlu0 %1118 }
0x18c7   :  { %v1121_v10 = vmul.f32 %v1119_v9, %v1104_v60 }
0x18c9   :  { %v1125_v7 = vpack.c.bf16 %v1121_v10, %v1012_v38 }
0x18ca   :  { %v1146_v17 = vpop.permute.xlu0 %1145 }
0x18cb   :  { %1147 = vrot.lane.b32.xlu0 %v1125_v7, %s1587_s15  ;;  %1353 = vmatprep.mubr.msk.bf16.mxu1 %vm217_vm5, %v1146_v17 }
0x190c   :  { %v1351_v8 = vpop.f32.mrf.mxu0 }
0x190d   :  { %v1216_v20 = vadd.f32 %v1351_v8, %v1317_v18 }
0x190e   :  { %v1207_v14 = vpop.f32.mrf.mxu0 }
0x190f   :  { %1522 = vtanh.f32 %v1216_v20  ;;  %v1208_v21 = vadd.f32 %v1317_v18, %v1207_v14 }
0x1910   :  { %v1352_v2 = vpop.f32.mrf.mxu0 }
0x1911   :  { %1524 = vtanh.f32 %v1208_v21  ;;  %v1219_v57 = vadd.f32 %v1352_v2, %v1317_v18 }
0x1912   :  { %v1210_v15 = vpop.f32.mrf.mxu0 }
0x1913   :  { %1526 = vtanh.f32 %v1219_v57  ;;  %v1211_v12 = vadd.f32 %v1317_v18, %v1210_v15 }
0x1915   :  { %1528 = vtanh.f32 %v1211_v12 }
0x191c   :  { %v1523_v44 = vpop.eup %1522 }
0x191d   :  { %1248 = vst [vmem:[#allocation5 + $0x10] sm:$0xff] %v1523_v44 }
0x191e   :  { %v1525_v23 = vpop.eup %1524 }
0x191f   :  { %1246 = vst [vmem:[#allocation5] sm:$0xff] %v1525_v23 }
0x1920   :  { %v1527_v24 = vpop.eup %1526 }
0x1921   :  { %1249 = vst [vmem:[#allocation5 + $0x18] sm:$0xff] %v1527_v24 }
0x1922   :  { %v1529_v25 = vpop.eup %1528 }
0x1923   :  { %1247 = vst [vmem:[#allocation5 + $0x8] sm:$0xff] %v1529_v25 }
0x193d   :  { %v1148_v26 = vpop.permute.xlu0 %1147 }
0x193e   :  { %1354 = vmatmul.mubr.msk.bf16.vlgmr.msra.gmra.mxu1 %vm217_vm5, %v1148_v26 }
0x19fe   :  { %v1355_v27 = vpop.f32.mrf.mxu1 }
0x19ff   :  { %v1232_v35 = vadd.f32 %v1355_v27, %v1317_v18 }
0x1a00   :  { %v1223_v28 = vpop.f32.mrf.mxu1 }
0x1a01   :  { %1530 = vtanh.f32 %v1232_v35  ;;  %v1224_v30 = vadd.f32 %v1317_v18, %v1223_v28 }
0x1a02   :  { %v1356_v29 = vpop.f32.mrf.mxu1 }
0x1a03   :  { %1532 = vtanh.f32 %v1224_v30  ;;  %v1235_v31 = vadd.f32 %v1356_v29, %v1317_v18 }
0x1a04   :  { %v1226_v32 = vpop.f32.mrf.mxu1 }
0x1a05   :  { %1534 = vtanh.f32 %v1235_v31  ;;  %v1227_v36 = vadd.f32 %v1317_v18, %v1226_v32 }
0x1a07   :  { %1536 = vtanh.f32 %v1227_v36 }
0x1a0e   :  { %v1531_v33 = vpop.eup %1530 }
0x1a0f   :  { %1252 = vst [vmem:[#allocation5 + $0x30] sm:$0xff] %v1531_v33 }
0x1a10   :  { %v1533_v34 = vpop.eup %1532 }
0x1a11   :  { %1250 = vst [vmem:[#allocation5 + $0x20] sm:$0xff] %v1533_v34 }
0x1a12   :  { %v1535_v5 = vpop.eup %1534 }
0x1a13   :  { %1253 = vst [vmem:[#allocation5 + $0x38] sm:$0xff] %v1535_v5 }
0x1a14   :  { %v1537_v41 = vpop.eup %1536 }
0x1a15   :  { %1251 = vst [vmem:[#allocation5 + $0x28] sm:$0xff] %v1537_v41 }
0x1a16   :  { %1570 = shalt.err (!%p1567_p9)
}
0x1a17   :  { %1265 = dma.vmem_to_hbm [thread:$0]  %s1260_s29, 1024, %s2059_s7, [#allocation4], %s1584_s27, %s1584_s27, %s1585_s28  }
0x1a18   :  { %1581 = dma.done.wait [#allocation4], 1024  }
0x1a19   :  { %1582 = vsyncadd [#allocation4], 4294966272 }
0x1a1a   :  { %1269 = vsyncpa [#allocation3], 1 }
0x1a1b   :  { %1270 = vsyncpa [#allocation4], 1 }

</bundles_post_ra>
